<compile_context>
chip_gen: v6e
topology: v6e:2x2x1
jax: 0.10.0
libtpu: 0.0.40
codegen_flags: <defaults>
</compile_context>

<pallas_src>
import functools

import jax
import jax.numpy as jnp
from jax.experimental import pallas as pl
from jax.experimental.pallas import tpu as pltpu


# ----------------------------------------------------------------------------
# Pallas kernel: one-hot build + ONE stacked GEMM + tiny DNN tail + combine
# ----------------------------------------------------------------------------
def deepfm_kernel(xin_ref, lhs_ref, b1_ref, w2_ref, b2_ref, w3_ref, bias_ref,
                  out_ref, *, field_pads, ids_pad_rows, n_dense_pad, embed_dim,
                  h1_row, sigmoid_out):
    tb = out_ref.shape[-1]                         # batch tile (lane axis)
    D = embed_dim
    HI = jax.lax.Precision.HIGHEST                 # fp32 contract on the MXU

    # Dense features travel bit-cast to int32 in the same DMA as the ids.
    dense = pltpu.bitcast(
        xin_ref[ids_pad_rows:ids_pad_rows + n_dense_pad, :], jnp.float32)

    # Per-field one-hot blocks: each field's id is compared only against its
    # own (padded) vocab range.  Out-of-range / negative ids yield an all-zero
    # row (no contribution) rather than wrapping like fancy indexing would.
    blocks = []
    for f, vp in enumerate(field_pads):            # F is tiny -> static unroll
        iota = jax.lax.broadcasted_iota(jnp.int32, (vp, tb), 0)
        blocks.append((xin_ref[f:f + 1, :] == iota).astype(jnp.float32))
    rhs = jnp.concatenate(blocks + [dense], axis=0)          # (Vp+Fdp, tb)

    # ONE stacked MXU matmul.  Output rows:
    #   [0:D]          sum_f v_f                    (FM sum of embeddings)
    #   [D]            sum_f ||v_f||^2              (FM sum of squares)
    #   [D+1]          first-order (sparse + dense) linear part
    #   [h1_row:]      DNN layer-1 pre-activation (before bias)
    stk = jnp.dot(lhs_ref[...], rhs,
                  preferred_element_type=jnp.float32, precision=HI)

    sum_v = stk[0:D, :]                                       # (D, tb)
    sum_v2 = stk[D:D + 1, :]                                  # (1, tb)
    lin = stk[D + 1:D + 2, :]                                 # (1, tb)
    z1 = stk[h1_row:, :]                                      # (H1, tb)

    # FM second order: 0.5 * [ (sum_f v)^2 - sum_f v^2 ] summed over dims.
    inter = 0.5 * (jnp.sum(sum_v * sum_v, axis=0, keepdims=True) - sum_v2)

    # Deep part: tanh hidden layers, final dim-1 layer as VPU mul + reduce.
    h = jnp.tanh(z1 + b1_ref[...])                            # (H1, tb)
    h = jnp.tanh(jnp.dot(w2_ref[...], h,
                         preferred_element_type=jnp.float32, precision=HI)
                 + b2_ref[...])                               # (H2, tb)
    deep = jnp.sum(h * w3_ref[...], axis=0, keepdims=True)    # (1, tb)

    total = lin + inter + deep + bias_ref[0]                  # scalar bias (SMEM)
    if sigmoid_out:
        total = jax.nn.sigmoid(total)
    out_ref[...] = total                                      # lane-dense store


# ----------------------------------------------------------------------------
# Wrapper: one-time parameter re-layout (tiny) + pallas_call
# ----------------------------------------------------------------------------
def _round_up(n, m):
    return -(-n // m) * m


def _pad_rows(x, n):
    return jnp.zeros((n,) + x.shape[1:], x.dtype).at[: x.shape[0]].set(x)


def deepfm_forward(sparse_idx, dense_x, params, *, sigmoid_out=False, tb=512):
    embed_tables = params["embed"]        # list of (num_f, D)
    lin_tables = params["lin_embed"]      # list of (num_f, 1)
    wd, bd = params["lin_dense_w"], params["lin_dense_b"]     # (Fd,1), (1,1)
    w1, b1 = params["w1"], params["b1"]
    w2, b2 = params["w2"], params["b2"]
    w3, b3 = params["w3"], params["b3"]

    B = sparse_idx.shape[0]
    F = len(embed_tables)
    D = embed_tables[0].shape[1]
    Fd = dense_x.shape[1]
    H1, H2 = w1.shape[1], w2.shape[1]
    f32 = jnp.float32
    HI = jax.lax.Precision.HIGHEST

    tb = min(tb, B)
    assert B % tb == 0, "batch must be a multiple of the batch tile"
    assert tb == B or tb % 128 == 0, "batch tile must be lane aligned"

    # Per-field sublane-padded vocab sizes; categories are laid out per field.
    field_pads = tuple(max(8, _round_up(t.shape[0], 8)) for t in embed_tables)
    Vp = sum(field_pads)                  # total padded #categories
    Fdp = max(8, _round_up(Fd, 8))        # padded #dense features
    Fp_ids = max(8, _round_up(F, 8))      # padded #id rows in the fused stream
    h1_row = _round_up(D + 2, 8)          # row where layer-1 block starts
    Mp = h1_row + H1                      # stacked-LHS row count

    # Scalability guard: one-hot path keeps all tables VMEM-resident.
    # TODO(synk): scalar-prefetch gather path for large vocabularies (v7x VMEM).
    assert Vp <= 4096, "one-hot DeepFM kernel is sized for small vocabularies"

    # ---- one-time parameter re-layout (all tiny) ----
    # Category columns of the stacked LHS.
    cat_tbl = jnp.concatenate(
        [_pad_rows(embed_tables[f].astype(f32), field_pads[f])
         for f in range(F)], axis=0)                                   # (Vp, D)
    cat_sq = jnp.sum(cat_tbl * cat_tbl, axis=1, keepdims=True)         # (Vp, 1)
    cat_lin = jnp.concatenate(
        [_pad_rows(lin_tables[f].astype(f32), field_pads[f])
         for f in range(F)], axis=0)                                   # (Vp, 1)
    # Fuse the sparse half of DNN layer 1 with the embedding tables:
    #   row j of field f  ==  embed_f[j] @ W1[f*D:(f+1)*D]
    # so the one-hot selection reproduces  sum_f v_f @ W1_f  exactly.
    cat_w1 = jnp.concatenate(
        [_pad_rows(jnp.dot(embed_tables[f].astype(f32),
                           w1[f * D:(f + 1) * D].astype(f32), precision=HI),
                   field_pads[f]) for f in range(F)], axis=0)          # (Vp, H1)

    # Dense-feature columns of the stacked LHS.
    den_tbl = jnp.zeros((Fdp, D), f32)
    den_sq = jnp.zeros((Fdp, 1), f32)
    den_lin = _pad_rows(wd.astype(f32), Fdp)                           # (Fdp, 1)
    den_w1 = _pad_rows(w1[F * D:].astype(f32), Fdp)                    # (Fdp, H1)

    pad_mid = h1_row - (D + 2)
    lhs_cat = jnp.concatenate(
        [cat_tbl, cat_sq, cat_lin, jnp.zeros((Vp, pad_mid), f32), cat_w1],
        axis=1)                                                        # (Vp, Mp)
    lhs_den = jnp.concatenate(
        [den_tbl, den_sq, den_lin, jnp.zeros((Fdp, pad_mid), f32), den_w1],
        axis=1)                                                        # (Fdp, Mp)
    lhs = jnp.concatenate([lhs_cat, lhs_den], axis=0).T                # (Mp, Vp+Fdp)

    b1_c = b1.reshape(H1, 1).astype(f32)                               # (H1, 1)
    w2_t = w2.T.astype(f32)                                            # (H2, H1)
    b2_c = b2.reshape(H2, 1).astype(f32)                               # (H2, 1)
    w3_c = w3.astype(f32)                                              # (H2, 1)
    bias_s = jnp.reshape(
        bd.astype(f32).reshape(()) + b3.astype(f32).reshape(()), (1,))  # SMEM

    # Fused per-sample stream: [ id rows (int32) ; dense rows bitcast to int32 ]
    # -> a single (Fp_ids+Fdp, tb) DMA per grid step.
    ids_t = _pad_rows(sparse_idx.astype(jnp.int32).T, Fp_ids)          # (Fp_ids, B)
    dense_bits = jax.lax.bitcast_convert_type(
        _pad_rows(dense_x.astype(f32).T, Fdp), jnp.int32)              # (Fdp, B)
    xin = jnp.concatenate([ids_t, dense_bits], axis=0)                 # int32

    def _full(a):
        nd = a.ndim
        return pl.BlockSpec(a.shape, lambda i, _nd=nd: (0,) * _nd)

    kernel = functools.partial(
        deepfm_kernel, field_pads=field_pads, ids_pad_rows=Fp_ids,
        n_dense_pad=Fdp, embed_dim=D, h1_row=h1_row, sigmoid_out=sigmoid_out)

    out = pl.pallas_call(
        kernel,
        out_shape=jax.ShapeDtypeStruct((1, B), f32),
        grid=(B // tb,),
        in_specs=[
            pl.BlockSpec((Fp_ids + Fdp, tb), lambda i: (0, i)),  # fused stream
            _full(lhs),                                          # stacked GEMM LHS
            _full(b1_c), _full(w2_t), _full(b2_c), _full(w3_c),  # DNN tail
            pl.BlockSpec(memory_space=pltpu.MemorySpace.SMEM),   # scalar biases
        ],
        out_specs=pl.BlockSpec((1, tb), lambda i: (0, i)),       # lane-dense out
        compiler_params=pltpu.CompilerParams(
            dimension_semantics=("parallel",)),
    )(xin, lhs, b1_c, w2_t, b2_c, w3_c, bias_s)

    return out[0]                      # (B,)  — matches .squeeze(1)


# ----------------------------------------------------------------------------
# Pure-JAX reference (full f32 precision, for correctness check)
# ----------------------------------------------------------------------------
def deepfm_reference(sparse_idx, dense_x, params, *, sigmoid_out=False):
    HI = jax.lax.Precision.HIGHEST
    F = len(params["embed"])
    fm = jnp.stack([params["embed"][f][sparse_idx[:, f]] for f in range(F)],
                   axis=1)
    B, _, D = fm.shape
    sum_f = jnp.sum(fm, axis=1)
    inter = 0.5 * jnp.sum(sum_f ** 2 - jnp.sum(fm ** 2, axis=1), axis=-1)
    lin_sp = sum(params["lin_embed"][f][sparse_idx[:, f]][:, 0]
                 for f in range(F))
    lin = (lin_sp
           + jnp.dot(dense_x, params["lin_dense_w"], precision=HI)[:, 0]
           + params["lin_dense_b"][0, 0])
    deep_x = jnp.concatenate([fm.reshape(B, F * D), dense_x], axis=-1)
    h = jnp.tanh(jnp.dot(deep_x, params["w1"], precision=HI) + params["b1"])
    h = jnp.tanh(jnp.dot(h, params["w2"], precision=HI) + params["b2"])
    deep = (jnp.dot(h, params["w3"], precision=HI) + params["b3"])[:, 0]
    out = lin + inter + deep
    if sigmoid_out:
        out = jax.nn.sigmoid(out)
    return out


# ----------------------------------------------------------------------------
if __name__ == "__main__":
    key = jax.random.PRNGKey(0)

    # Model config (small, consistent with the module's __init__)
    sparse_nums = [10, 20, 30]        # len(sparse_feat_and_nums) = 3
    n_dense = 5                       # len(dense_feat) = 5
    embed_dim = 8
    deep_layers = [32, 16, 1]         # last hidden dim must be 1
    B = 2048                          # tb=512 -> grid of 4 (>=2 steps / v7x core)

    F = len(sparse_nums)
    DI = F * embed_dim + n_dense

    keys = jax.random.split(key, 16)
    scale = 0.1
    params = {
        "embed": [scale * jax.random.normal(keys[f], (sparse_nums[f], embed_dim),
                                            jnp.float32) for f in range(F)],
        "lin_embed": [scale * jax.random.normal(keys[3 + f], (sparse_nums[f], 1),
                                                jnp.float32) for f in range(F)],
        "lin_dense_w": scale * jax.random.normal(keys[6], (n_dense, 1), jnp.float32),
        "lin_dense_b": jnp.zeros((1, 1), jnp.float32),
        "w1": scale * jax.random.normal(keys[7], (DI, deep_layers[0]), jnp.float32),
        "b1": jnp.zeros((1, deep_layers[0]), jnp.float32),
        "w2": scale * jax.random.normal(keys[8], (deep_layers[0], deep_layers[1]),
                                        jnp.float32),
        "b2": jnp.zeros((1, deep_layers[1]), jnp.float32),
        "w3": scale * jax.random.normal(keys[9], (deep_layers[1], deep_layers[2]),
                                        jnp.float32),
        "b3": jnp.zeros((1, deep_layers[2]), jnp.float32),
    }

    sparse_idx = jnp.stack(
        [jax.random.randint(keys[10 + f], (B,), 0, sparse_nums[f], jnp.int32)
         for f in range(F)], axis=1)                                  # (B, 3) int32
    dense_x = jax.random.normal(keys[13], (B, n_dense), jnp.float32)  # (B, 5) f32

    # --- no sigmoid ---
    out = deepfm_forward(sparse_idx, dense_x, params, sigmoid_out=False, tb=512)
    out = jax.block_until_ready(out)
    ref = deepfm_reference(sparse_idx, dense_x, params, sigmoid_out=False)
    assert out.shape == (B,)
    assert jnp.allclose(out, ref, atol=1e-4, rtol=1e-4), (
        float(jnp.max(jnp.abs(out - ref))))

    # --- with sigmoid ---
    out_s = deepfm_forward(sparse_idx, dense_x, params, sigmoid_out=True, tb=512)
    out_s = jax.block_until_ready(out_s)
    ref_s = deepfm_reference(sparse_idx, dense_x, params, sigmoid_out=True)
    assert jnp.allclose(out_s, ref_s, atol=1e-4, rtol=1e-4), (
        float(jnp.max(jnp.abs(out_s - ref_s))))

    print("KERNEL_OK")
</pallas_src>

<mosaic_0001>
module attributes {stable_mosaic.version = 11 : i64} {
  func.func @deepfm_kernel(%arg0: i32, %arg1: memref<16x512xi32, #tpu.memory_space<vmem>>, %arg2: memref<48x80xf32, #tpu.memory_space<vmem>>, %arg3: memref<32x1xf32, #tpu.memory_space<vmem>>, %arg4: memref<16x32xf32, #tpu.memory_space<vmem>>, %arg5: memref<16x1xf32, #tpu.memory_space<vmem>>, %arg6: memref<16x1xf32, #tpu.memory_space<vmem>>, %arg7: memref<1xf32, #tpu.memory_space<smem>>, %arg8: memref<1x512xf32, #tpu.memory_space<vmem>>) attributes {dimension_semantics = [#tpu.dimension_semantics<parallel>], iteration_bounds = array<i64: 4>, scalar_prefetch = 0 : i64, scratch_operands = 0 : i64, tpu.core_type = #tpu.core_type<tc>, window_params = [{transform_indices = @transform_0, window_bounds = array<i64: 16, 512>}, {pipeline_mode = #tpu.pipeline_mode<synchronous>, transform_indices = @transform_1, window_bounds = array<i64: 48, 80>}, {pipeline_mode = #tpu.pipeline_mode<synchronous>, transform_indices = @transform_2, window_bounds = array<i64: 32, 1>}, {pipeline_mode = #tpu.pipeline_mode<synchronous>, transform_indices = @transform_3, window_bounds = array<i64: 16, 32>}, {pipeline_mode = #tpu.pipeline_mode<synchronous>, transform_indices = @transform_4, window_bounds = array<i64: 16, 1>}, {pipeline_mode = #tpu.pipeline_mode<synchronous>, transform_indices = @transform_5, window_bounds = array<i64: 16, 1>}, {transform_indices = @transform_6, window_bounds = array<i64: 1>}, {transform_indices = @transform_7, window_bounds = array<i64: 1, 512>}]} {
    %c8 = arith.constant 8 : index
    %c0 = arith.constant 0 : index
    %0 = vector.load %arg1[%c8, %c0] : memref<16x512xi32, #tpu.memory_space<vmem>>, vector<8x512xi32>
    %1 = tpu.bitcast %0 : vector<8x512xi32> -> vector<8x512xf32>
    %2 = tpu.iota {dimensions = array<i32: 0>} : vector<16x512xi32>
    %c0_0 = arith.constant 0 : index
    %c0_1 = arith.constant 0 : index
    %3 = vector.load %arg1[%c0_0, %c0_1] : memref<16x512xi32, #tpu.memory_space<vmem>>, vector<1x512xi32>
    %4 = vector.broadcast %3 : vector<1x512xi32> to vector<16x512xi32>
    %5 = arith.cmpi eq, %4, %2 : vector<16x512xi32>
    %6 = arith.extui %5 : vector<16x512xi1> to vector<16x512xi32>
    %7 = arith.sitofp %6 : vector<16x512xi32> to vector<16x512xf32>
    %8 = tpu.iota {dimensions = array<i32: 0>} : vector<24x512xi32>
    %c1 = arith.constant 1 : index
    %c0_2 = arith.constant 0 : index
    %9 = vector.load %arg1[%c1, %c0_2] : memref<16x512xi32, #tpu.memory_space<vmem>>, vector<1x512xi32>
    %10 = vector.broadcast %9 : vector<1x512xi32> to vector<24x512xi32>
    %11 = arith.cmpi eq, %10, %8 : vector<24x512xi32>
    %12 = arith.extui %11 : vector<24x512xi1> to vector<24x512xi32>
    %13 = arith.sitofp %12 : vector<24x512xi32> to vector<24x512xf32>
    %14 = tpu.iota {dimensions = array<i32: 0>} : vector<32x512xi32>
    %c2 = arith.constant 2 : index
    %c0_3 = arith.constant 0 : index
    %15 = vector.load %arg1[%c2, %c0_3] : memref<16x512xi32, #tpu.memory_space<vmem>>, vector<1x512xi32>
    %16 = vector.broadcast %15 : vector<1x512xi32> to vector<32x512xi32>
    %17 = arith.cmpi eq, %16, %14 : vector<32x512xi32>
    %18 = arith.extui %17 : vector<32x512xi1> to vector<32x512xi32>
    %19 = arith.sitofp %18 : vector<32x512xi32> to vector<32x512xf32>
    %20 = tpu.concatenate %7, %13, %19, %1 in 0 : vector<16x512xf32>, vector<24x512xf32>, vector<32x512xf32>, vector<8x512xf32> -> vector<80x512xf32>
    %c0_4 = arith.constant 0 : index
    %c0_5 = arith.constant 0 : index
    %21 = vector.load %arg2[%c0_4, %c0_5] : memref<48x80xf32, #tpu.memory_space<vmem>>, vector<48x80xf32>
    %cst = arith.constant dense<0.000000e+00> : vector<48x512xf32>
    %22 = tpu.matmul %21, %20, %cst {dimension_numbers = #tpu.dot_dimension_numbers<[1], [0], [0], [1], [0, 0, 1, 1], [], []>, precision = #tpu.contract_precision<fp32>} : vector<48x80xf32>, vector<80x512xf32>, vector<48x512xf32> -> vector<48x512xf32>
    %23 = vector.extract_strided_slice %22 {offsets = [0, 0], sizes = [8, 512], strides = [1, 1]} : vector<48x512xf32> to vector<8x512xf32>
    %24 = vector.extract_strided_slice %22 {offsets = [8, 0], sizes = [1, 512], strides = [1, 1]} : vector<48x512xf32> to vector<1x512xf32>
    %25 = vector.extract_strided_slice %22 {offsets = [9, 0], sizes = [1, 512], strides = [1, 1]} : vector<48x512xf32> to vector<1x512xf32>
    %26 = vector.extract_strided_slice %22 {offsets = [16, 0], sizes = [32, 512], strides = [1, 1]} : vector<48x512xf32> to vector<32x512xf32>
    %27 = arith.mulf %23, %23 : vector<8x512xf32>
    %cst_6 = arith.constant dense<0.000000e+00> : vector<512xf32>
    %28 = vector.multi_reduction <add>, %27, %cst_6 [0] : vector<8x512xf32> to vector<512xf32>
    %29 = vector.shape_cast %28 : vector<512xf32> to vector<1x512xf32>
    %30 = arith.subf %29, %24 : vector<1x512xf32>
    %cst_7 = arith.constant 5.000000e-01 : f32
    %31 = vector.broadcast %cst_7 : f32 to vector<1x512xf32>
    %32 = arith.mulf %31, %30 : vector<1x512xf32>
    %c0_8 = arith.constant 0 : index
    %c0_9 = arith.constant 0 : index
    %33 = vector.load %arg3[%c0_8, %c0_9] : memref<32x1xf32, #tpu.memory_space<vmem>>, vector<32x1xf32>
    %34 = vector.broadcast %33 : vector<32x1xf32> to vector<32x512xf32>
    %35 = arith.addf %26, %34 : vector<32x512xf32>
    %36 = math.tanh %35 : vector<32x512xf32>
    %c0_10 = arith.constant 0 : index
    %c0_11 = arith.constant 0 : index
    %37 = vector.load %arg4[%c0_10, %c0_11] : memref<16x32xf32, #tpu.memory_space<vmem>>, vector<16x32xf32>
    %cst_12 = arith.constant dense<0.000000e+00> : vector<16x512xf32>
    %38 = tpu.matmul %37, %36, %cst_12 {dimension_numbers = #tpu.dot_dimension_numbers<[1], [0], [0], [1], [0, 0, 1, 1], [], []>, precision = #tpu.contract_precision<fp32>} : vector<16x32xf32>, vector<32x512xf32>, vector<16x512xf32> -> vector<16x512xf32>
    %c0_13 = arith.constant 0 : index
    %c0_14 = arith.constant 0 : index
    %39 = vector.load %arg5[%c0_13, %c0_14] : memref<16x1xf32, #tpu.memory_space<vmem>>, vector<16x1xf32>
    %40 = vector.broadcast %39 : vector<16x1xf32> to vector<16x512xf32>
    %41 = arith.addf %38, %40 : vector<16x512xf32>
    %42 = math.tanh %41 : vector<16x512xf32>
    %c0_15 = arith.constant 0 : index
    %c0_16 = arith.constant 0 : index
    %43 = vector.load %arg6[%c0_15, %c0_16] : memref<16x1xf32, #tpu.memory_space<vmem>>, vector<16x1xf32>
    %44 = vector.broadcast %43 : vector<16x1xf32> to vector<16x512xf32>
    %45 = arith.mulf %42, %44 : vector<16x512xf32>
    %cst_17 = arith.constant dense<0.000000e+00> : vector<512xf32>
    %46 = vector.multi_reduction <add>, %45, %cst_17 [0] : vector<16x512xf32> to vector<512xf32>
    %47 = vector.shape_cast %46 : vector<512xf32> to vector<1x512xf32>
    %48 = arith.addf %25, %32 : vector<1x512xf32>
    %49 = arith.addf %48, %47 : vector<1x512xf32>
    %c0_18 = arith.constant 0 : index
    %50 = memref.load %arg7[%c0_18] : memref<1xf32, #tpu.memory_space<smem>>
    %51 = vector.broadcast %50 : f32 to vector<1x512xf32>
    %52 = arith.addf %49, %51 : vector<1x512xf32>
    %c0_19 = arith.constant 0 : index
    %c0_20 = arith.constant 0 : index
    %53 = vector.load %arg8[%c0_19, %c0_20] : memref<1x512xf32, #tpu.memory_space<vmem>>, vector<1x512xf32>
    tpu.vector_store %arg8[%c0_19, %c0_20], %52 {strides = array<i32>} : memref<1x512xf32, #tpu.memory_space<vmem>>, vector<1x512xf32>,
    return
  }
  func.func @transform_0(%arg0: i32) -> (i32, i32) {
    %c0_i32 = arith.constant 0 : i32
    %c0_i32_0 = arith.constant 0 : i32
    return %c0_i32, %arg0 : i32, i32
  }
  func.func @transform_1(%arg0: i32) -> (i32, i32) {
    %c0_i32 = arith.constant 0 : i32
    %c0_i32_0 = arith.constant 0 : i32
    %c0_i32_1 = arith.constant 0 : i32
    return %c0_i32, %c0_i32_0 : i32, i32
  }
  func.func @transform_2(%arg0: i32) -> (i32, i32) {
    %c0_i32 = arith.constant 0 : i32
    %c0_i32_0 = arith.constant 0 : i32
    %c0_i32_1 = arith.constant 0 : i32
    return %c0_i32, %c0_i32_0 : i32, i32
  }
  func.func @transform_3(%arg0: i32) -> (i32, i32) {
    %c0_i32 = arith.constant 0 : i32
    %c0_i32_0 = arith.constant 0 : i32
    %c0_i32_1 = arith.constant 0 : i32
    return %c0_i32, %c0_i32_0 : i32, i32
  }
  func.func @transform_4(%arg0: i32) -> (i32, i32) {
    %c0_i32 = arith.constant 0 : i32
    %c0_i32_0 = arith.constant 0 : i32
    %c0_i32_1 = arith.constant 0 : i32
    return %c0_i32, %c0_i32_0 : i32, i32
  }
  func.func @transform_5(%arg0: i32) -> (i32, i32) {
    %c0_i32 = arith.constant 0 : i32
    %c0_i32_0 = arith.constant 0 : i32
    %c0_i32_1 = arith.constant 0 : i32
    return %c0_i32, %c0_i32_0 : i32, i32
  }
  func.func @transform_6(%arg0: i32) -> i32 {
    %c0_i32 = arith.constant 0 : i32
    %c0_i32_0 = arith.constant 0 : i32
    return %c0_i32 : i32
  }
  func.func @transform_7(%arg0: i32) -> (i32, i32) {
    %c0_i32 = arith.constant 0 : i32
    %c0_i32_0 = arith.constant 0 : i32
    return %c0_i32, %arg0 : i32, i32
  }
}

</mosaic_0001>

<bundles_post_ra>
// kernel: tpu_custom_call.1
= control target key start
LH: loop header
LB: loop body
LE: loop exit
PB: predicated region body
PF: predicated region fallthrough
CT: control target
= control target key end

     0   :  { %s6399_s0 = inlined_call_operand.hbm [shape: s32[16,2048], index: 0, kind: input, shape index: {}]   ;;  %s6400_s1 = inlined_call_operand.vmem [shape: f32[48,80], index: 1, kind: input, shape index: {}]   ;;  %s6401_s2 = inlined_call_operand.vmem [shape: f32[32,1], index: 2, kind: input, shape index: {}]   ;;  %s6402_s3 = inlined_call_operand.vmem [shape: f32[16,32], index: 3, kind: input, shape index: {}]   ;;  %s6403_s4 = inlined_call_operand.vmem [shape: f32[16,1], index: 4, kind: input, shape index: {}]   ;;  %s6404_s5 = inlined_call_operand.vmem [shape: f32[16,1], index: 5, kind: input, shape index: {}]   ;;  %s6405_s6 = inlined_call_operand.<no memory space> [shape: f32[1], index: 6, kind: input, shape index: {}]   ;;  %s6406_s7 = inlined_call_operand.hbm [shape: f32[1,2048], index: 7, kind: output, shape index: {}]  }
   0x1   :  { %12 = sst [smem:[#allocation2]] %s6405_s6 }
   0x2   :  { %13 = vsyncpa [#allocation4], 0 }
   0x3   :  { %15 = vsyncpa [#allocation4 + $0x1], 0 }
   0x4   :  { %16 = vsyncpa [#allocation5], 0 }
   0x5   :  { %18 = vsyncpa [#allocation5 + $0x1], 0  ;;  %s4296_s26 = smov 0   ;;  %s4298_s27 = smov 0  }
   0x6   :  { %s4300_s28 = smov 0   ;;  %s4302_s29 = smov 0  }
   0x7 LB: > { %s4317_s6 = sadd.s32 4294967295, %s4242_s29   ;;  %s3885_s30 = sadd.s32 4294967294, %s4242_s29   ;;  %s4242_s29 = sphi %s4302_s29, %s6606_s29   ;;  %s4238_s28 = sphi %s4300_s28, %s6605_s28   ;;  %s4234_s27 = sphi %s4298_s27, %s6604_s27   ;;  %s4230_s26 = sphi %s4296_s26, %s6603_s26  }
   0x8   : > { %s4321_s8 = sadd.s32 1, %s4242_s29   ;;  %s31_s9 = sadd.s32 1, %s4238_s28 }
   0x9   : > { %s28_s10 = ssub.s32 %s4242_s29, %s4321_s8  ;;  %p38_p0 = scmp.ne.s32.totalorder %s4238_s28, %s4234_s27 }
   0xa   : > { %p29_p1 = scmp.eq.s32.totalorder %s28_s10, 0  ;;  %p39_p2 = scmp.eq.s32.totalorder %s4242_s29, 0 }
   0xb   : > { %p44_p3 = scmp.ne.s32.totalorder %s4234_s27, %s4230_s26  ;;  %p45_p4 = scmp.eq.s32.totalorder %s4317_s6, 0 }
   0xc   : > { %s4333_s11 = scalar_select %p29_p1, %s4238_s28, %s31_s9  }
   0xd   : > { %p4335_p5 = por %p39_p2, %p38_p0  ;;  %p4339_p6 = por %p45_p4, %p44_p3 }
   0xe   : > { %p194_p7 = scmp.eq.s32.totalorder %s4317_s6, 3  ;;  %p200_p8 = scmp.eq.s32.totalorder %s3885_s30, 3 }
   0xf   : > { %s6466_s13 = scalar_select %p4339_p6, 1, 0 }
  0x10   : > { %p4059_p9 = scmp.lt.s32.totalorder %s4242_s29, 4  ;;  %p4345_p10 = por %p194_p7, %p38_p0 }
  0x11   : > { %p4349_p11 = por %p200_p8, %p44_p3  ;;  %s238_s16 = sand.u32 1, %s4238_s28  }
  0x12   : > { %s6467_s14 = scalar_select %p4345_p10, 1, 0 }
  0x13   : > { %s6468_s15 = scalar_select %p4349_p11, 1, 0 }
  0x14   : > { %s4045_s17 = sshll.u32 %s4242_s29, 9  ;;  %s3888_s18 = sshll.u32 %s238_s16, 6 }
  0x15   : > { %s4358_s21 = scalar_lea.hbm %s6399_s0, %s4045_s17  ;;  %s242_s22 = scalar_lea.vmem [#allocation3], %s3888_s18 }
  0x16   : > { %s249_s23 = sshll.u32 %s242_s22, 4  ;;  %p4362_p12 = pnand %p4059_p9, %p4335_p5  ;;  %s4366_s23 = int_to_ptr.vmem [resolvable:$true] %s249_s23 }
  0x17   : > { %s4369_s25 = scalar_lea.sflag [#allocation4], %s238_s16  ;;  %s4150_s30 = scalar_lea.hbm %s4358_s21, 1024 }
  0x18   : > { %p4151_p0 = scmp.ne.s32.totalorder %s4358_s21, %s4150_s30  ;;  %p4152_p1 = pneg %p4362_p12 }
  0x19   : > { %s4155_s12 = scalar_lea.hbm %s6399_s0, 4096  ;;  %p4156_p4 = scmp.lt.s32.totalorder %s4358_s21, %s6399_s0 }
  0x1a   : > { %p4153_p2 = pnand %p4152_p1, %p4151_p0  ;;  %p4157_p5 = scmp.lt.s32.totalorder %s4155_s12, %s4150_s30 }
  0x1c   : > { %p4154_p3 = pneg %p4153_p2  ;;  %p4158_p7 = por %p4157_p5, %p4156_p4 }
  0x1e   : > { %p4159_p8 = pnand %p4158_p7, %p4154_p3 }
  0x20   : > { %4162 = shalt.err (!%p4159_p8)
}
  0x21   : > { %s4163_s16 = scalar_lea.vmem %s4366_s23, 1024  ;;  %s4244_s19 = smov [#allocation3]  }
  0x22   : > { %p4164_p9 = scmp.ne.s32.totalorder %s4366_s23, %s4163_s16  ;;  %s4168_s20 = sshll.u32 %s4244_s19, 4  ;;  %s4169_s20 = int_to_ptr.vmem [resolvable:$false] %s4168_s20 }
  0x23   : > { %s4170_s22 = scalar_lea.vmem %s4169_s20, 2048  ;;  %p4171_p2 = scmp.lt.s32.totalorder %s4366_s23, %s4169_s20 }
  0x24   : > { %p4166_p13 = pnand %p4164_p9, %p4152_p1  ;;  %p4172_p11 = scmp.lt.s32.totalorder %s4170_s22, %s4163_s16 }
  0x26   : > { %p4167_p0 = pneg %p4166_p13  ;;  %p4173_p10 = por %p4172_p11, %p4171_p2 }
  0x28   : > { %p4174_p6 = pnand %p4173_p10, %p4167_p0 }
  0x2a   : > { %4177 = shalt.err (!%p4174_p6)
}
  0x2b   : > { %s4245_s30 = smov 2048   ;;  %s4246_s9 = smov 512  }
  0x2c   : > { %s4247_s10 = smov 32   ;;  %p257_p13 = scmp.lt.s32.totalorder %s4242_s29, 5 }
  0x2d   : > { %4054 = dma.hbm_to_vmem [thread:$0]  (!%p4362_p12), %s4358_s21, 1024, %s4366_s23, %s4369_s25, %s4245_s30, %s4246_s9, %s4247_s10  }
  0x2e   : > { %p6470_p1 = scmp.ge.s32.totalorder %s4242_s29, 1 }
  0x30   : > { %p258_p3 = pnand %p6470_p1, %p257_p13 }
  0x32   : > { %261 = sbr.rel (%p258_p3) target bundleno = 791 (0x317), region = 48 }
  0x37   : > { %s4394_s12 = sand.u32 1, %s4234_s27   ;;  %p6471_p6 = scmp.ne.s32.totalorder %s6466_s13, 0 }
  0x38   : > { %s3892_s17 = sshll.u32 %s4394_s12, 6  ;;  %s264_s18 = scalar_lea.sflag [#allocation4], %s4394_s12 }
  0x39   : > { %s4398_s16 = scalar_lea.vmem [#allocation3], %s3892_s17 }
  0x3a   : > { %4221 = dma.done.wait (%p6471_p6), %s264_s18, 1024  }
  0x3b   : > { %4223 = vsyncadd (%p6471_p6), %s264_s18, 4294966272  ;;  %v6412_v0 = vlaneseq  ;;  %v6453_v1 = vmov 0.0   ;;  %vm480_vm0 = vcmask 654336   ;;  %v301_v9 = vld [vmem:[%s4398_s16 + $0x28] sm:$0xff]  ;;  %v300_v10 = vld [vmem:[%s4398_s16 + $0x20] sm:$0xff]  ;;  %v6432_v27 = vmov 1.0  }
  0x3c   : > { %583 = vmatprep.mubr.f32.mxu0 %v6453_v1  ;;  %814 = vmatprep.mubr.f32.mxu1 %v6453_v1  ;;  %v4430_v11 = vld [vmem:[%s4398_s16 + $0x2] ss:$8 sm:$0xf]  ;;  %v4435_v13 = vand.u32 4294901760, %v301_v9  ;;  %v4437_v14 = vand.u32 4294901760, %v300_v10  ;;  %s3760_s25 = sld [smem:[#allocation2]] }
  0x3d   : > { %v4407_v2 = vshrl.u32 %v6412_v0, 7  ;;  %v4448_v17 = vld [vmem:[%s4398_s16 + $0x1] ss:$8 sm:$0xf]  ;;  %s3893_s19 = sshll.u32 %s4394_s12, 2  ;;  %s4046_s20 = sshll.u32 %s4317_s6, 6 }
  0x3e   : > { %v474_v18 = vld [vmem:[%s6400_s1] sm:$0xff]  ;;  %512 = vmatprep.subr.mxu0 %v4435_v13  ;;  %v4517_v32 = vsub.f32 %v301_v9, %v4435_v13  ;;  %v4557_v41 = vsub.f32 %v300_v10, %v4437_v14  ;;  %s297_s22 = scalar_lea.vmem [#allocation6], %s3893_s19  ;;  %s3813_s17 = scalar_lea.hbm %s6406_s7, %s4046_s20 }
  0x3f   : > { %6472 = vst [vmem:[#allocation9_spill] sm:$0xff] %v4407_v2  ;;  %v4410_v3 = vsub.s32 1, %v4407_v2  ;;  %v4413_v4 = vsub.s32 0, %v4407_v2  ;;  %v4416_v5 = vsub.s32 3, %v4407_v2  ;;  %v4419_v6 = vadd.s32 24, %v4407_v2  ;;  %514 = vmatpush1.msra.mxu0 %v4437_v14  ;;  %s3815_s30 = sshll.u32 %s297_s22, 4  ;;  %s3816_s30 = int_to_ptr.vmem [resolvable:$true] %s3815_s30 }
  0x40   : > { %v4422_v7 = vadd.s32 16, %v4407_v2  ;;  %v4425_v8 = vadd.s32 8, %v4407_v2  ;;  %v4433_v12 = vsub.s32 2, %v4407_v2  ;;  %v4462_v21 = vsel %vm480_vm0, %v474_v18, 0  ;;  %s3801_s18 = scalar_lea.sflag [#allocation5], %s4394_s12  ;;  %p6601_p11 = scmp.ne.s32.totalorder %s6467_s14, 0 }
  0x41   : > { %v4441_v15 = vrot.slane %v4430_v11, %v4410_v3  ;;  %v4445_v16 = vrot.slane %v4430_v11, %v4413_v4  ;;  %v4455_v19 = vrot.slane %v4448_v17, %v4410_v3  ;;  %v4459_v20 = vrot.slane %v4448_v17, %v4413_v4  ;;  %v4638_v63 = vld [vmem:[%s4398_s16] ss:$8 sm:$0xf]  ;;  %s4252_s13 = smov [#allocation6]  }
  0x42   : > { %v4466_v22 = vrot.slane %v4430_v11, %v4416_v5  ;;  %v6431_v39 = vand.u32 4294901760, %v4517_v32  ;;  %v6430_v46 = vand.u32 4294901760, %v4557_v41  ;;  %s4182_s6 = sshll.u32 %s4252_s13, 4  ;;  %s4183_s6 = int_to_ptr.vmem [resolvable:$false] %s4182_s6 }
  0x43   : > { %vm439_vm1 = vcmp.eq.s32.totalorder %v4441_v15, %v4419_v6  ;;  %vm438_vm2 = vcmp.eq.s32.totalorder %v4445_v16, %v4419_v6  ;;  %vm435_vm3 = vcmp.eq.s32.totalorder %v4441_v15, %v4422_v7  ;;  %vm6438_vm4 = vcmp.eq.s32.totalorder %v4445_v16, %v4422_v7  ;;  %s4184_s21 = scalar_lea.vmem %s4183_s6, 128  ;;  %p4185_p5 = scmp.lt.s32.totalorder %s3816_s30, %s4183_s6 }
  0x44   : > { %v3929_v23 = vsel %vm439_vm1, 1.0, %v6453_v1  ;;  %v3928_v24 = vsel %vm438_vm2, 1.0, %v6453_v1  ;;  %v3925_v25 = vsel %vm435_vm3, 1.0, %v6453_v1  ;;  %v3924_v26 = vsel %vm6438_vm4, 1.0, %v6453_v1  ;;  %3932 = vmatprep.subr.msk.mxu0 %vm439_vm1, %v6432_v27 }
  0x45   : > { %v4498_v28 = vsub.f32 %v3929_v23, %v3929_v23  ;;  %v4500_v29 = vsub.f32 %v3928_v24, %v3928_v24  ;;  %v4502_v30 = vsub.f32 %v3925_v25, %v3925_v25  ;;  %v4504_v31 = vsub.f32 %v3924_v26, %v3924_v26  ;;  %3933 = vmatpush1.msk.msra.mxu0 %vm438_vm2, %v6432_v27 }
  0x46   : > { %vm431_vm5 = vcmp.eq.s32.totalorder %v4441_v15, %v4425_v8  ;;  %vm430_vm6 = vcmp.eq.s32.totalorder %v4445_v16, %v4425_v8  ;;  %vm427_vm7 = vcmp.eq.s32.totalorder %v4441_v15, %v4407_v2  ;;  %3934 = vmatprep.subr.msk.mxu0 %vm435_vm3, %v6432_v27  ;;  %vm426_vm8 = vcmp.eq.s32.totalorder %v4445_v16, %v4407_v2 }
  0x47   : > { %v3921_v33 = vsel %vm431_vm5, 1.0, %v6453_v1  ;;  %v3920_v34 = vsel %vm430_vm6, 1.0, %v6453_v1  ;;  %v3917_v35 = vsel %vm427_vm7, 1.0, %v6453_v1  ;;  %3935 = vmatpush1.msk.msra.mxu0 %vm6438_vm4, %v6432_v27  ;;  %v3916_v40 = vsel %vm426_vm8, 1.0, %v6453_v1 }
  0x48   : > { %v4541_v36 = vsub.f32 %v3921_v33, %v3921_v33  ;;  %v4543_v37 = vsub.f32 %v3920_v34, %v3920_v34  ;;  %v4545_v38 = vsub.f32 %v3917_v35, %v3917_v35  ;;  %3936 = vmatprep.subr.msk.mxu0 %vm431_vm5, %v6432_v27  ;;  %vm380_vm9 = vcmp.eq.s32.totalorder %v4455_v19, %v4422_v7 }
  0x49   : > { %v6428_v42 = vand.u32 4294901760, %v4498_v28  ;;  %3937 = vmatpush1.msk.msra.mxu0 %vm430_vm6, %v6432_v27  ;;  %v665_v43 = vsub.f32 %v4517_v32, %v6431_v39  ;;  %v4569_v44 = vsub.f32 %v3916_v40, %v3916_v40  ;;  %v3912_v45 = vsel %vm380_vm9, 1.0, %v6453_v1 }
  0x4a   : > { %vm379_vm10 = vcmp.eq.s32.totalorder %v4459_v20, %v4422_v7  ;;  %3938 = vmatprep.subr.msk.mxu0 %vm427_vm7, %v6432_v27  ;;  %v4582_v47 = vsub.f32 %v3912_v45, %v3912_v45  ;;  %v6425_v52 = vand.u32 4294901760, %v4500_v29  ;;  %vm376_vm11 = vcmp.eq.s32.totalorder %v4455_v19, %v4425_v8 }
  0x4b   : > { %v677_v48 = vsub.f32 %v4498_v28, %v6428_v42  ;;  %v3911_v49 = vsel %vm379_vm10, 1.0, %v6453_v1  ;;  %v666_v50 = vand.u32 4294901760, %v665_v43  ;;  %3939 = vmatpush1.msk.msra.mxu0 %vm426_vm8, %v6432_v27  ;;  %v671_v53 = vsub.f32 %v4557_v41, %v6430_v46 }
  0x4c   : > { %v4595_v51 = vsub.f32 %v3911_v49, %v3911_v49  ;;  %3940 = vmatprep.subr.msk.mxu0 %vm380_vm9, %v6432_v27  ;;  %v3908_v55 = vsel %vm376_vm11, 1.0, %v6453_v1  ;;  %v6424_v56 = vand.u32 4294901760, %v4502_v30  ;;  %v683_v57 = vsub.f32 %v4500_v29, %v6425_v52 }
  0x4d   : > { %v678_v54 = vand.u32 4294901760, %v677_v48  ;;  %667 = vmatprep.subr.mxu1 %v666_v50  ;;  %3941 = vmatpush1.msk.msra.mxu0 %vm379_vm10, %v6432_v27  ;;  %v4619_v58 = vsub.f32 %v3908_v55, %v3908_v55  ;;  %vm375_vm12 = vcmp.eq.s32.totalorder %v4459_v20, %v4425_v8  ;;  %v6423_v59 = vand.u32 4294901760, %v4504_v31 }
  0x4e   : > { %v672_v60 = vand.u32 4294901760, %v671_v53  ;;  %3942 = vmatprep.subr.msk.mxu0 %vm376_vm11, %v6432_v27  ;;  %v689_v61 = vsub.f32 %v4502_v30, %v6424_v56  ;;  %v3907_v62 = vsel %vm375_vm12, 1.0, %v6453_v1  ;;  %vm6410_vm13 = vcmp.eq.s32.totalorder %v4455_v19, %v4407_v2 }
  0x4f   : > { %v684_v9 = vand.u32 4294901760, %v683_v57  ;;  %3943 = vmatpush1.msk.msra.mxu0 %vm375_vm12, %v6432_v27  ;;  %v4644_v10 = vsub.f32 %v3907_v62, %v3907_v62  ;;  %v695_v18 = vsub.f32 %v4504_v31, %v6423_v59  ;;  %v3904_v23 = vsel %vm6410_vm13, 1.0, %v6453_v1 }
  0x50   : > { %673 = vmatpush1.msra.mxu1 %v672_v60  ;;  %v690_v24 = vand.u32 4294901760, %v689_v61  ;;  %3944 = vmatprep.subr.msk.mxu0 %vm6410_vm13, %v6432_v27  ;;  %v4657_v25 = vsub.f32 %v3904_v23, %v3904_v23  ;;  %v6421_v26 = vand.u32 4294901760, %v4541_v36  ;;  %vm6409_vm14 = vcmp.eq.s32.totalorder %v4459_v20, %v4407_v2 }
  0x51   : > { %679 = vmatprep.subr.mxu1 %v678_v54  ;;  %v696_v33 = vand.u32 4294901760, %v695_v18  ;;  %v3903_v34 = vsel %vm6409_vm14, 1.0, %v6453_v1  ;;  %3945 = vmatpush1.msk.msra.mxu0 %vm6409_vm14, %v6432_v27  ;;  %v6419_v35 = vand.u32 4294901760, %v4543_v37  ;;  %v4673_v40 = vrot.slane %v4638_v63, %v4410_v3 }
  0x52   : > { %685 = vmatpush1.msra.mxu1 %v684_v9  ;;  %v701_v43 = vsub.f32 %v4541_v36, %v6421_v26  ;;  %v4678_v45 = vsub.f32 %v3903_v34, %v3903_v34  ;;  %v6416_v48 = vand.u32 4294901760, %v4545_v38  ;;  %v4683_v49 = vrot.slane %v4638_v63, %v4413_v4 }
  0x53   : > { %691 = vmatprep.subr.mxu1 %v690_v24  ;;  %v707_v50 = vsub.f32 %v4543_v37, %v6419_v35  ;;  %vm333_vm15 = vcmp.eq.s32.totalorder %v4673_v40, %v4425_v8  ;;  %v6415_v3 = vand.u32 4294901760, %v4569_v44  ;;  %vm329_vm14 = vcmp.eq.s32.totalorder %v4673_v40, %v4407_v2 }
  0x54   : > { %697 = vmatpush1.msra.mxu1 %v696_v33  ;;  %v702_v53 = vand.u32 4294901760, %v701_v43  ;;  %v3899_v4 = vsel %vm333_vm15, 1.0, %v6453_v1  ;;  %3946 = vmatprep.subr.msk.mxu0 %vm333_vm15, %v6432_v27  ;;  %v713_v54 = vsub.f32 %v4545_v38, %v6416_v48  ;;  %vm6411_vm13 = vcmp.eq.s32.totalorder %v4683_v49, %v4425_v8 }
  0x55   : > { %v708_v55 = vand.u32 4294901760, %v707_v50  ;;  %v4706_v57 = vsub.f32 %v3899_v4, %v3899_v4  ;;  %v3898_v60 = vsel %vm6411_vm13, 1.0, %v6453_v1  ;;  %3947 = vmatpush1.msk.msra.mxu0 %vm6411_vm13, %v6432_v27  ;;  %v719_v61 = vsub.f32 %v4569_v44, %v6415_v3 }
  0x56   : > { %703 = vmatprep.subr.mxu1 %v702_v53  ;;  %v714_v62 = vand.u32 4294901760, %v713_v54  ;;  %v4719_v9 = vsub.f32 %v3898_v60, %v3898_v60  ;;  %v3895_v18 = vsel %vm329_vm14, 1.0, %v6453_v1  ;;  %3948 = vmatprep.subr.msk.mxu0 %vm329_vm14, %v6432_v27  ;;  %v6413_v23 = vand.u32 4294901760, %v4582_v47  ;;  %v475_v54 = vld [vmem:[%s6400_s1 + $0x8] sm:$0xff] }
  0x57   : > { %709 = vmatpush1.msra.mxu1 %v708_v55  ;;  %v720_v24 = vand.u32 4294901760, %v719_v61  ;;  %v4730_v33 = vsub.f32 %v3895_v18, %v3895_v18  ;;  %vm6435_vm13 = vcmp.eq.s32.totalorder %v4683_v49, %v4407_v2  ;;  %v6414_v34 = vand.u32 4294901760, %v4595_v51 }
  0x58   : > { %715 = vmatprep.subr.mxu1 %v714_v62  ;;  %v725_v43 = vsub.f32 %v4582_v47, %v6413_v23  ;;  %v3894_v50 = vsel %vm6435_vm13, 1.0, %v6453_v1  ;;  %3949 = vmatpush1.msk.msra.mxu0 %vm6435_vm13, %v6432_v27  ;;  %v4747_v53 = vand.u32 4294901760, %v4462_v21  ;;  %v6417_v4 = vand.u32 4294901760, %v4619_v58 }
  0x59   : > { %721 = vmatpush1.msra.mxu1 %v720_v24  ;;  %v4753_v55 = vsub.f32 %v3894_v50, %v3894_v50  ;;  %v731_v60 = vsub.f32 %v4595_v51, %v6414_v34  ;;  %v6418_v61 = vand.u32 4294901760, %v4644_v10  ;;  %v6420_v62 = vand.u32 4294901760, %v4657_v25  ;;  %871 = vmatprep.subr.mxu0 %v4517_v32 }
  0x5a   : > { %v726_v18 = vand.u32 4294901760, %v725_v43  ;;  %v4763_v0 = vsub.f32 %v4462_v21, %v4747_v53  ;;  %v737_v24 = vsub.f32 %v4619_v58, %v6417_v4  ;;  %v6422_v50 = vand.u32 4294901760, %v4678_v45 }
  0x5b   : > { %v732_v23 = vand.u32 4294901760, %v731_v60  ;;  %v743_v34 = vsub.f32 %v4644_v10, %v6418_v61  ;;  %v749_v3 = vsub.f32 %v4657_v25, %v6420_v62  ;;  %v485_v43 = vsel %vm480_vm0, %v475_v54, 0  ;;  %v476_v61 = vld [vmem:[%s6400_s1 + $0x10] sm:$0xff] }
  0x5c   : > { %727 = vmatprep.subr.mxu1 %v726_v18  ;;  %v4777_v21 = vand.u32 4294901760, %v4763_v0  ;;  %v738_v48 = vand.u32 4294901760, %v737_v24  ;;  %v755_v4 = vsub.f32 %v4678_v45, %v6422_v50  ;;  %v4782_v60 = vand.u32 4294901760, %v485_v43 }
  0x5d   : > { %733 = vmatpush1.msra.mxu1 %v732_v23  ;;  %v744_v35 = vand.u32 4294901760, %v743_v34  ;;  %v750_v62 = vand.u32 4294901760, %v749_v3  ;;  %v6427_v54 = vand.u32 4294901760, %v4706_v57  ;;  %v6426_v18 = vand.u32 4294901760, %v4719_v9  ;;  %v477_v23 = vld [vmem:[%s6400_s1 + $0x18] sm:$0xff] }
  0x5e   : > { %v587_v24 = vsub.f32 %v4763_v0, %v4777_v21  ;;  %739 = vmatprep.subr.mxu1 %v738_v48  ;;  %v756_v26 = vand.u32 4294901760, %v755_v4  ;;  %v4792_v50 = vsub.f32 %v485_v43, %v4782_v60  ;;  %v6429_v59 = vand.u32 4294901760, %v4730_v33 }
  0x5f   : > { %745 = vmatpush1.msra.mxu1 %v744_v35  ;;  %v761_v3 = vsub.f32 %v4706_v57, %v6427_v54  ;;  %v767_v34 = vsub.f32 %v4719_v9, %v6426_v18  ;;  %v6434_v48 = vand.u32 4294901760, %v4753_v55  ;;  %v488_v4 = vsel %vm480_vm0, %v476_v61, 0  ;;  %v478_v18 = vld [vmem:[%s6400_s1 + $0x20] sm:$0xff]  ;;  %v479_v61 = vld [vmem:[%s6400_s1 + $0x28] sm:$0xff] }
  0x60   : > { %v4806_v43 = vand.u32 4294901760, %v587_v24  ;;  %751 = vmatprep.subr.mxu1 %v750_v62  ;;  %v4809_v56 = vand.u32 4294901760, %v4792_v50  ;;  %v773_v35 = vsub.f32 %v4730_v33, %v6429_v59  ;;  %v4814_v52 = vand.u32 4294901760, %v488_v4 }
  0x61   : > { %757 = vmatpush1.msra.mxu1 %v756_v26  ;;  %v762_v24 = vand.u32 4294901760, %v761_v3  ;;  %v768_v62 = vand.u32 4294901760, %v767_v34  ;;  %v779_v54 = vsub.f32 %v4753_v55, %v6434_v48  ;;  %v491_v42 = vsel %vm480_vm0, %v477_v23, 0 }
  0x62   : > { %589 = vmatmul.mubr.f32.vlgmr.msra.gmra.mxu0 %v4806_v43  ;;  %v598_v59 = vsub.f32 %v4792_v50, %v4809_v56  ;;  %v774_v46 = vand.u32 4294901760, %v773_v35  ;;  %v4830_v39 = vsub.f32 %v488_v4, %v4814_v52  ;;  %v4832_v27 = vand.u32 4294901760, %v491_v42 }
  0x63   : > { %594 = vmatprep.mubr.f32.mxu0 %v6453_v1  ;;  %763 = vmatprep.subr.mxu1 %v762_v24  ;;  %v780_v26 = vand.u32 4294901760, %v779_v54  ;;  %v494_v3 = vsel %vm480_vm0, %v478_v18, 0  ;;  %v497_v34 = vsel %vm480_vm0, %v479_v61, 0  ;;  %vm6481_vm13 = vcmp.eq.s32.totalorder %v4455_v19, %v4407_v2 }
  0x64   : > { %v4837_v23 = vand.u32 4294901760, %v598_v59  ;;  %769 = vmatpush1.msra.mxu1 %v768_v62  ;;  %874 = vmatpush1.msra.mxu0 %v4557_v41  ;;  %v4841_v35 = vand.u32 4294901760, %v4830_v39  ;;  %v4844_v4 = vsub.f32 %v491_v42, %v4832_v27  ;;  %v4846_v48 = vand.u32 4294901760, %v494_v3 }
  0x65   : > { %775 = vmatprep.subr.mxu1 %v774_v46  ;;  %877 = vmatprep.subr.mxu0 %v4498_v28  ;;  %v4849_v54 = vand.u32 4294901760, %v497_v34  ;;  %v4855_v59 = vrot.slane %v4430_v11, %v4433_v12  ;;  %vm6482_vm0 = vcmp.eq.s32.totalorder %v4459_v20, %v4407_v2  ;;  %v6502_v15 = vand.u32 4294901760, %v4706_v57 }
  0x66   : > { %600 = vmatmul.mubr.f32.gmra.mxu0 %v4837_v23  ;;  %781 = vmatpush1.msra.mxu1 %v780_v26  ;;  %v609_v42 = vsub.f32 %v4830_v39, %v4841_v35  ;;  %v4861_v18 = vand.u32 4294901760, %v4844_v4  ;;  %v4864_v46 = vsub.f32 %v494_v3, %v4846_v48 }
  0x67   : > { %605 = vmatprep.mubr.f32.mxu0 %v6453_v1  ;;  %880 = vmatpush1.msra.mxu0 %v4500_v29  ;;  %v4882_v62 = vsub.f32 %v497_v34, %v4849_v54  ;;  %v6478_v34 = vmov 1.0  }
  0x68   : > { %6473 = vst [vmem:[#allocation10_spill] sm:$0xff] %v4861_v18  ;;  %v4868_v61 = vand.u32 4294901760, %v609_v42  ;;  %816 = vmatmul.mubr.f32.vlgmr.msra.gmra.mxu1 %v4747_v53  ;;  %883 = vmatprep.subr.mxu0 %v4502_v30  ;;  %v620_v11 = vsub.f32 %v4844_v4, %v4861_v18  ;;  %v4875_v24 = vand.u32 4294901760, %v4864_v46 }
  0x69   : > { %1023 = vmatprep.subr.mxu1 %v4435_v13  ;;  %886 = vmatpush1.msra.mxu0 %v4504_v31  ;;  %6476 = vst [vmem:[#allocation13_spill] sm:$0xff] %v4882_v62  ;;  %v4906_v42 = vand.u32 4294901760, %v4882_v62 }
  0x6a   : > { %6474 = vst [vmem:[#allocation11_spill] sm:$0xff] %v4868_v61  ;;  %6475 = vst [vmem:[#allocation12_spill] sm:$0xff] %v4875_v24  ;;  %611 = vmatmul.mubr.f32.gmra.mxu0 %v4868_v61  ;;  %1025 = vmatpush1.msra.mxu1 %v4437_v14  ;;  %v4888_v26 = vand.u32 4294901760, %v620_v11  ;;  %v631_v3 = vsub.f32 %v4864_v46, %v4875_v24  ;;  %v4941_v61 = vrot.slane %v4448_v17, %v4433_v12 }
  0x6b   : > { %889 = vmatprep.subr.mxu0 %v4541_v36  ;;  %616 = vmatprep.mubr.f32.mxu0 %v6453_v1  ;;  %6479 = vst [vmem:[#allocation15_spill] sm:$0xff] %v4906_v42 }
  0x6c   : > { %6477 = vst [vmem:[#allocation14_spill] sm:$0xff] %v4888_v26  ;;  %821 = vmatprep.mubr.f32.mxu1 %v6453_v1  ;;  %892 = vmatpush1.msra.mxu0 %v4543_v37  ;;  %v4917_v11 = vand.u32 4294901760, %v631_v3  ;;  %v4935_v3 = vrot.slane %v4448_v17, %v4416_v5 }
  0x6d   : > { %3950 = vmatprep.subr.msk.mxu1 %vm439_vm1, %v6478_v34  ;;  %823 = vmatmul.mubr.f32.gmra.mxu1 %v4782_v60 }
  0x6e   : > { %622 = vmatmul.mubr.f32.gmra.mxu0 %v4888_v26  ;;  %895 = vmatprep.subr.mxu0 %v4545_v38  ;;  %v642_v26 = vsub.f32 %v4882_v62, %v4906_v42 }
  0x6f   : > { %3951 = vmatpush1.msk.msra.mxu1 %vm438_vm2, %v6478_v34  ;;  %898 = vmatpush1.msra.mxu0 %v4569_v44 }
  0x70   : > { %3952 = vmatprep.subr.msk.mxu1 %vm435_vm3, %v6478_v34  ;;  %901 = vmatprep.subr.mxu0 %v4582_v47  ;;  %v4957_v17 = vand.u32 4294901760, %v642_v26  ;;  %v4989_v26 = vrot.slane %v4638_v63, %v4416_v5  ;;  %v6483_v5 = vand.u32 4294901760, %v4517_v32  ;;  %v6488_v32 = vand.u32 4294901760, %v4500_v29 }
  0x71   : > { %3953 = vmatpush1.msk.msra.mxu1 %vm6438_vm4, %v6478_v34  ;;  %627 = vmatprep.mubr.f32.mxu0 %v6453_v1  ;;  %v6492_v29 = vand.u32 4294901760, %v4543_v37  ;;  %v302_v37 = vld [vmem:[%s4398_s16 + $0x30] sm:$0xff] }
  0x72   : > { %828 = vmatprep.mubr.f32.mxu1 %v6453_v1  ;;  %904 = vmatpush1.msra.mxu0 %v4595_v51  ;;  %6480 = vst [vmem:[#allocation16_spill] sm:$0xff] %v4957_v17 }
  0x73   : > { %633 = vmatmul.mubr.f32.gmra.mxu0 %v4917_v11  ;;  %830 = vmatmul.mubr.f32.gmra.mxu1 %v4814_v52 }
  0x74   : > { %907 = vmatprep.subr.mxu0 %v4619_v58  ;;  %3954 = vmatprep.subr.msk.mxu1 %vm431_vm5, %v6478_v34 }
  0x75   : > { %910 = vmatpush1.msra.mxu0 %v4644_v10  ;;  %3955 = vmatpush1.msk.msra.mxu1 %vm430_vm6, %v6478_v34 }
  0x76   : > { %913 = vmatprep.subr.mxu0 %v4657_v25  ;;  %3956 = vmatprep.subr.msk.mxu1 %vm427_vm7, %v6478_v34 }
  0x77   : > { %638 = vmatprep.mubr.f32.mxu0 %v6453_v1  ;;  %835 = vmatprep.mubr.f32.mxu1 %v6453_v1 }
  0x78   : > { %916 = vmatpush1.msra.mxu0 %v4678_v45  ;;  %3957 = vmatpush1.msk.msra.mxu1 %vm426_vm8, %v6478_v34 }
  0x79   : > { %644 = vmatmul.mubr.f32.gmra.mxu0 %v4957_v17  ;;  %837 = vmatmul.mubr.f32.gmra.mxu1 %v4832_v27  ;;  %v4995_v17 = vrot.slane %v4638_v63, %v4433_v12  ;;  %v6485_v12 = vand.u32 4294901760, %v4557_v41  ;;  %v6486_v63 = vand.u32 4294901760, %v4498_v28  ;;  %v6489_v41 = vand.u32 4294901760, %v4502_v30 }
  0x7a   : > { %919 = vmatprep.subr.mxu0 %v4706_v57  ;;  %3958 = vmatprep.subr.msk.mxu1 %vm380_vm9, %v6478_v34  ;;  %v6490_v28 = vand.u32 4294901760, %v4504_v31  ;;  %v6495_v30 = vand.u32 4294901760, %v4582_v47  ;;  %v303_v31 = vld [vmem:[%s4398_s16 + $0x38] sm:$0xff]  ;;  %v6499_v47 = vand.u32 4294901760, %v4644_v10  ;;  %v6501_v10 = vand.u32 4294901760, %v4678_v45  ;;  %s4178_s16 = scalar_lea.vmem %s3816_s30, 64 }
  0x7b   : > { %922 = vmatpush1.msra.mxu0 %v4719_v9  ;;  %3959 = vmatpush1.msk.msra.mxu1 %vm379_vm10, %v6478_v34  ;;  %vm334_vm4 = vcmp.eq.s32.totalorder %v4995_v17, %v4425_v8  ;;  %v6505_v57 = vand.u32 4294901760, %v4730_v33  ;;  %p4179_p10 = scmp.ne.s32.totalorder %s3816_s30, %s4178_s16  ;;  %p4186_p7 = scmp.lt.s32.totalorder %s4184_s21, %s4178_s16 }
  0x7c   : > { %925 = vmatprep.subr.mxu0 %v4730_v33  ;;  %842 = vmatprep.mubr.f32.mxu1 %v6453_v1 }
  0x7d   : > { %928 = vmatpush1.msra.mxu0 %v4753_v55  ;;  %961 = vmatprep.mubr.f32.mxu0 %v6453_v1  ;;  %p4180_p12 = pnand %p4179_p10, %p6601_p11  ;;  %p4187_p8 = por %p4186_p7, %p4185_p5 }
  0x7e   : > { %3960 = vmatprep.subr.msk.mxu1 %vm376_vm11, %v6478_v34  ;;  %844 = vmatmul.mubr.f32.gmra.mxu1 %v4846_v48 }
  0x7f   : > { %964 = vmatmul.mubr.f32.vlgmr.msra.gmra.mxu0 %v4763_v0  ;;  %3961 = vmatpush1.msk.msra.mxu1 %vm375_vm12, %v6478_v34  ;;  %p4181_p4 = pneg %p4180_p12 }
  0x80   : > { %3962 = vmatprep.subr.msk.mxu1 %vm6481_vm13, %v6478_v34  ;;  %849 = vmatprep.mubr.f32.mxu1 %v6453_v1  ;;  %vm6484_vm13 = vcmp.eq.s32.totalorder %v4683_v49, %v4425_v8 }
  0x81   : > { %3963 = vmatpush1.msk.msra.mxu1 %vm6482_vm0, %v6478_v34  ;;  %969 = vmatprep.mubr.f32.mxu0 %v6453_v1  ;;  %vm6487_vm0 = vcmp.eq.s32.totalorder %v4683_v49, %v4407_v2  ;;  %p4188_p9 = pnand %p4187_p8, %p4181_p4 }
  0x82   : > { %851 = vmatmul.mubr.f32.gmra.mxu1 %v4849_v54  ;;  %3964 = vmatprep.subr.msk.mxu1 %vm333_vm15, %v6478_v34 }
  0x83   : > { %972 = vmatmul.mubr.f32.gmra.mxu0 %v4792_v50  ;;  %1164 = vmatprep.subr.mxu0 %v6483_v5  ;;  %v6491_v5 = vand.u32 4294901760, %v4541_v36  ;;  %v6497_v36 = vand.u32 4294901760, %v4595_v51  ;;  %v6500_v51 = vand.u32 4294901760, %v4657_v25 }
  0x84   : > { %3965 = vmatpush1.msk.msra.mxu1 %vm6484_vm13, %v6478_v34  ;;  %1168 = vmatpush1.msra.mxu0 %v6485_v12  ;;  %v6504_v12 = vand.u32 4294901760, %v4719_v9  ;;  %v6507_v9 = vand.u32 4294901760, %v4753_v55 }
  0x85   : > { %3966 = vmatprep.subr.msk.mxu1 %vm329_vm14, %v6478_v34  ;;  %1172 = vmatprep.subr.mxu0 %v6486_v63 }
  0x86   : > { %977 = vmatprep.mubr.f32.mxu0 %v6453_v1  ;;  %3967 = vmatpush1.msk.msra.mxu1 %vm6487_vm0, %v6478_v34 }
  0x87   : > { %1094 = vmatprep.mubr.f32.mxu1 %v6453_v1  ;;  %1176 = vmatpush1.msra.mxu0 %v6488_v32 }
  0x88   : > { %980 = vmatmul.mubr.f32.gmra.mxu0 %v4830_v39  ;;  %1098 = vmatmul.mubr.f32.vlgmr.msra.gmra.mxu1 %v4777_v21 }
  0x89   : > { %1180 = vmatprep.subr.mxu0 %v6489_v41  ;;  %1329 = vmatprep.subr.mxu1 %v4435_v13  ;;  %v6493_v13 = vand.u32 4294901760, %v4545_v38  ;;  %v6498_v38 = vand.u32 4294901760, %v4619_v58  ;;  %v5117_v58 = vand.u32 4294901760, %v302_v37 }
  0x8a   : > { %1184 = vmatpush1.msra.mxu0 %v6490_v28  ;;  %1331 = vmatpush1.msra.mxu1 %v4437_v14  ;;  %v6494_v14 = vand.u32 4294901760, %v4569_v44  ;;  %v5103_v44 = vand.u32 4294901760, %v303_v31 }
  0x8b   : > { %1188 = vmatprep.subr.mxu0 %v6491_v5  ;;  %985 = vmatprep.mubr.f32.mxu0 %v6453_v1  ;;  %v5139_v45 = vsub.f32 %v302_v37, %v5117_v58 }
  0x8c   : > { %1103 = vmatprep.mubr.f32.mxu1 %v6453_v1  ;;  %1192 = vmatpush1.msra.mxu0 %v6492_v29  ;;  %v5128_v25 = vsub.f32 %v303_v31, %v5103_v44 }
  0x8d   : > { %3968 = vmatprep.subr.msk.mxu1 %vm439_vm1, %v6478_v34  ;;  %988 = vmatmul.mubr.f32.gmra.mxu0 %v4844_v4  ;;  %vm6496_vm1 = vcmp.eq.s32.totalorder %v4445_v16, %v4422_v7  ;;  %v6447_v28 = vand.u32 4294901760, %v5139_v45 }
  0x8e   : > { %1107 = vmatmul.mubr.f32.gmra.mxu1 %v4809_v56  ;;  %1196 = vmatprep.subr.mxu0 %v6493_v13  ;;  %v6448_v32 = vand.u32 4294901760, %v5128_v25 }
  0x8f   : > { %3969 = vmatpush1.msk.msra.mxu1 %vm438_vm2, %v6478_v34  ;;  %1200 = vmatpush1.msra.mxu0 %v6494_v14  ;;  %vm6503_vm2 = vcmp.eq.s32.totalorder %v4466_v22, %v4419_v6 }
  0x90   : > { %3970 = vmatprep.subr.msk.mxu1 %vm435_vm3, %v6478_v34  ;;  %1204 = vmatprep.subr.mxu0 %v6495_v30  ;;  %v3931_v16 = vsel %vm6503_vm2, 1.0, %v6453_v1  ;;  %vm6506_vm3 = vcmp.eq.s32.totalorder %v4855_v59, %v4419_v6  ;;  %v1609_v13 = vsub.f32 %v5128_v25, %v6448_v32 }
  0x91   : > { %3971 = vmatpush1.msk.msra.mxu1 %vm6496_vm1, %v6478_v34  ;;  %993 = vmatprep.mubr.f32.mxu0 %v6453_v1  ;;  %v3930_v63 = vsel %vm6506_vm3, 1.0, %v6453_v1  ;;  %v5162_v41 = vsub.f32 %v3931_v16, %v3931_v16  ;;  %vm6518_vm1 = vcmp.eq.s32.totalorder %v4935_v3, %v4422_v7 }
  0x92   : > { %1112 = vmatprep.mubr.f32.mxu1 %v6453_v1  ;;  %1208 = vmatpush1.msra.mxu0 %v6497_v36  ;;  %v5183_v5 = vsub.f32 %v3930_v63, %v3930_v63 }
  0x93   : > { %996 = vmatmul.mubr.f32.gmra.mxu0 %v4864_v46  ;;  %1116 = vmatmul.mubr.f32.gmra.mxu1 %v4841_v35  ;;  %v6446_v31 = vand.u32 4294901760, %v5162_v41 }
  0x94   : > { %1212 = vmatprep.subr.mxu0 %v6498_v38  ;;  %3972 = vmatprep.subr.msk.mxu1 %vm431_vm5, %v6478_v34  ;;  %vm6508_vm5 = vcmp.eq.s32.totalorder %v4466_v22, %v4422_v7  ;;  %v6442_v37 = vand.u32 4294901760, %v5183_v5  ;;  %v1610_v38 = vand.u32 4294901760, %v1609_v13 }
  0x95   : > { %1216 = vmatpush1.msra.mxu0 %v6499_v47  ;;  %3973 = vmatpush1.msk.msra.mxu1 %vm430_vm6, %v6478_v34  ;;  %v3927_v33 = vsel %vm6508_vm5, 1.0, %v6453_v1  ;;  %vm6509_vm6 = vcmp.eq.s32.totalorder %v4855_v59, %v4422_v7 }
  0x96   : > { %1220 = vmatprep.subr.mxu0 %v6500_v51  ;;  %3974 = vmatprep.subr.msk.mxu1 %vm427_vm7, %v6478_v34  ;;  %v3926_v55 = vsel %vm6509_vm6, 1.0, %v6453_v1  ;;  %vm429_vm7 = vcmp.eq.s32.totalorder %v4466_v22, %v4407_v2  ;;  %v5192_v29 = vsub.f32 %v3927_v33, %v3927_v33  ;;  %v1627_v63 = vsub.f32 %v5183_v5, %v6442_v37 }
  0x97   : > { %1001 = vmatprep.mubr.f32.mxu0 %v6453_v1  ;;  %1121 = vmatprep.mubr.f32.mxu1 %v6453_v1  ;;  %v5202_v14 = vsub.f32 %v3926_v55, %v3926_v55  ;;  %v3919_v36 = vsel %vm429_vm7, 1.0, %v6453_v1 }
  0x98   : > { %1224 = vmatpush1.msra.mxu0 %v6501_v10  ;;  %3975 = vmatpush1.msk.msra.mxu1 %vm426_vm8, %v6478_v34  ;;  %vm6510_vm8 = vcmp.eq.s32.totalorder %v4455_v19, %v4407_v2  ;;  %v6441_v10 = vand.u32 4294901760, %v5192_v29  ;;  %v5251_v16 = vsub.f32 %v3919_v36, %v3919_v36 }
  0x99   : > { %1004 = vmatmul.mubr.f32.gmra.mxu0 %v4882_v62  ;;  %1125 = vmatmul.mubr.f32.gmra.mxu1 %v4861_v18 }
  0x9a   : > { %1228 = vmatprep.subr.mxu0 %v6502_v15  ;;  %3976 = vmatprep.subr.msk.mxu1 %vm380_vm9, %v6478_v34  ;;  %vm6511_vm9 = vcmp.eq.s32.totalorder %v4459_v20, %v4407_v2  ;;  %v1615_v20 = vsub.f32 %v5139_v45, %v6447_v28  ;;  %v1621_v15 = vsub.f32 %v5162_v41, %v6446_v31  ;;  %v6445_v36 = vand.u32 4294901760, %v5251_v16 }
  0x9b   : > { %1232 = vmatpush1.msra.mxu0 %v6504_v12  ;;  %3977 = vmatpush1.msk.msra.mxu1 %vm379_vm10, %v6478_v34  ;;  %vm6512_vm10 = vcmp.eq.s32.totalorder %v4466_v22, %v4425_v8  ;;  %v1633_v33 = vsub.f32 %v5192_v29, %v6441_v10 }
  0x9c   : > { %1236 = vmatprep.subr.mxu0 %v6505_v57  ;;  %1130 = vmatprep.mubr.f32.mxu1 %v6453_v1  ;;  %v3923_v19 = vsel %vm6512_vm10, 1.0, %v6453_v1  ;;  %v6440_v57 = vand.u32 4294901760, %v5202_v14  ;;  %v1616_v40 = vand.u32 4294901760, %v1615_v20 }
  0x9d   : > { %1240 = vmatpush1.msra.mxu0 %v6507_v9  ;;  %1273 = vmatprep.mubr.f32.mxu0 %v6453_v1  ;;  %v5235_v47 = vsub.f32 %v3923_v19, %v3923_v19  ;;  %v3914_v9 = vsel %vm6518_vm1, 1.0, %v6453_v1  ;;  %v1622_v19 = vand.u32 4294901760, %v1621_v15 }
  0x9e   : > { %3978 = vmatprep.subr.msk.mxu1 %vm376_vm11, %v6478_v34  ;;  %1134 = vmatmul.mubr.f32.gmra.mxu1 %v4875_v24  ;;  %vm6513_vm11 = vcmp.eq.s32.totalorder %v4855_v59, %v4425_v8 }
  0x9f   : > { %1275 = vmatmul.mubr.f32.vlgmr.msra.gmra.mxu0 %v4747_v53  ;;  %3979 = vmatpush1.msk.msra.mxu1 %vm375_vm12, %v6478_v34  ;;  %v3922_v30 = vsel %vm6513_vm11, 1.0, %v6453_v1  ;;  %vm428_vm12 = vcmp.eq.s32.totalorder %v4855_v59, %v4407_v2  ;;  %v6443_v13 = vand.u32 4294901760, %v5235_v47 }
  0xa0   : > { %3980 = vmatprep.subr.msk.mxu1 %vm6510_vm8, %v6478_v34  ;;  %1139 = vmatprep.mubr.f32.mxu1 %v6453_v1  ;;  %v5237_v51 = vsub.f32 %v3922_v30, %v3922_v30  ;;  %v3918_v12 = vsel %vm428_vm12, 1.0, %v6453_v1  ;;  %v1639_v30 = vsub.f32 %v5202_v14, %v6440_v57  ;;  %vm6522_vm8 = vmmov %vm6512_vm10  ;;  %vm373_vm10 = vcmp.eq.s32.totalorder %v4941_v61, %v4407_v2 }
  0xa1   : > { %3981 = vmatpush1.msk.msra.mxu1 %vm6511_vm9, %v6478_v34  ;;  %1280 = vmatprep.mubr.f32.mxu0 %v6453_v1  ;;  %v5277_v49 = vsub.f32 %v3918_v12, %v3918_v12  ;;  %v5300_v12 = vsub.f32 %v3914_v9, %v3914_v9  ;;  %vm6523_vm9 = vcmp.eq.s32.totalorder %v4935_v3, %v4425_v8  ;;  %v1634_v9 = vand.u32 4294901760, %v1633_v33 }
  0xa2   : > { %1143 = vmatmul.mubr.f32.gmra.mxu1 %v4906_v42  ;;  %3982 = vmatprep.subr.msk.mxu1 %vm333_vm15, %v6478_v34  ;;  %vm6514_vm15 = vmmov %vm6484_vm13  ;;  %v6444_v20 = vand.u32 4294901760, %v5237_v51  ;;  %v1640_v10 = vand.u32 4294901760, %v1639_v30  ;;  %v3905_v30 = vsel %vm373_vm10, 1.0, %v6453_v1 }
  0xa3   : > { %1282 = vmatmul.mubr.f32.gmra.mxu0 %v4782_v60  ;;  %1456 = vmatprep.subr.mxu0 %v5103_v44  ;;  %vm6515_vm13 = vmmov %vm6503_vm2  ;;  %vm6519_vm2 = vcmp.eq.s32.totalorder %v4941_v61, %v4422_v7  ;;  %v6450_v57 = vand.u32 4294901760, %v5277_v49  ;;  %v5378_v31 = vsub.f32 %v3905_v30, %v3905_v30 }
  0xa4   : > { %3983 = vmatpush1.msk.msra.mxu1 %vm6514_vm15, %v6478_v34  ;;  %1458 = vmatpush1.msra.mxu0 %v5117_v58  ;;  %v3913_v55 = vsel %vm6519_vm2, 1.0, %v6453_v1  ;;  %vm6524_vm15 = vcmp.eq.s32.totalorder %v4941_v61, %v4425_v8  ;;  %v1651_v37 = vsub.f32 %v5237_v51, %v6444_v20  ;;  %v6449_v20 = vand.u32 4294901760, %v5300_v12 }
  0xa5   : > { %3984 = vmatprep.subr.msk.mxu1 %vm329_vm14, %v6478_v34  ;;  %3986 = vmatprep.subr.msk.mxu0 %vm6515_vm13, %v6478_v34  ;;  %vm6516_vm14 = vmmov %vm6487_vm0  ;;  %v5309_v15 = vsub.f32 %v3913_v55, %v3913_v55  ;;  %v3909_v55 = vsel %vm6524_vm15, 1.0, %v6453_v1  ;;  %vm6525_vm13 = vcmp.eq.s32.totalorder %v4989_v26, %v4425_v8 }
  0xa6   : > { %1287 = vmatprep.mubr.f32.mxu0 %v6453_v1  ;;  %3985 = vmatpush1.msk.msra.mxu1 %vm6516_vm14, %v6478_v34  ;;  %vm6517_vm0 = vmmov %vm6506_vm3  ;;  %vm331_vm14 = vcmp.eq.s32.totalorder %v4989_v26, %v4407_v2  ;;  %v1652_v32 = vand.u32 4294901760, %v1651_v37  ;;  %v1669_v37 = vsub.f32 %v5300_v12, %v6449_v20 }
  0xa7   : > { %1400 = vmatprep.mubr.f32.mxu1 %v6453_v1  ;;  %3987 = vmatpush1.msk.msra.mxu0 %vm6517_vm0, %v6478_v34  ;;  %vm6520_vm3 = vmmov %vm6508_vm5  ;;  %v6527_v30 = vand.u32 4294901760, %v5309_v15 }
  0xa8   : > { %1289 = vmatmul.mubr.f32.gmra.mxu0 %v4814_v52  ;;  %1402 = vmatmul.mubr.f32.vlgmr.msra.gmra.mxu1 %v4747_v53  ;;  %vm6521_vm5 = vmmov %vm6509_vm6  ;;  %vm374_vm6 = vcmp.eq.s32.totalorder %v4935_v3, %v4407_v2 }
  0xa9   : > { %3988 = vmatprep.subr.msk.mxu0 %vm6520_vm3, %v6478_v34  ;;  %1611 = vmatprep.subr.mxu1 %v1610_v38  ;;  %v1628_v38 = vand.u32 4294901760, %v1627_v63  ;;  %v1645_v63 = vsub.f32 %v5235_v47, %v6443_v13  ;;  %v3906_v33 = vsel %vm374_vm6, 1.0, %v6453_v1  ;;  %v1657_v13 = vsub.f32 %v5251_v16, %v6445_v36  ;;  %vm6526_vm0 = vmmov %vm6518_vm1 }
  0xaa   : > { %3989 = vmatpush1.msk.msra.mxu0 %vm6521_vm5, %v6478_v34  ;;  %1617 = vmatpush1.msra.mxu1 %v1616_v40  ;;  %v3910_v40 = vsel %vm6523_vm9, 1.0, %v6453_v1  ;;  %v5357_v36 = vsub.f32 %v3909_v55, %v3909_v55  ;;  %v5370_v28 = vsub.f32 %v3906_v33, %v3906_v33  ;;  %v1663_v55 = vsub.f32 %v5277_v49, %v6450_v57  ;;  %vm6528_vm3 = vmmov %vm6523_vm9 }
  0xab   : > { %3990 = vmatprep.subr.msk.mxu0 %vm6522_vm8, %v6478_v34  ;;  %1294 = vmatprep.mubr.f32.mxu0 %v6453_v1  ;;  %vm330_vm1 = vcmp.eq.s32.totalorder %v4995_v17, %v4407_v2  ;;  %vm6529_vm5 = vmmov %vm6524_vm15  ;;  %vm6538_vm9 = vcmp.eq.s32.totalorder %v4466_v22, %v4419_v6  ;;  %vm6541_vm15 = vcmp.eq.s32.totalorder %v4466_v22, %v4422_v7  ;;  %v3693_v17 = vld [vmem:[%s6404_s5 + $0x8] sm:$0xff] }
  0xac   : > { %1407 = vmatprep.mubr.f32.mxu1 %v6453_v1  ;;  %3991 = vmatpush1.msk.msra.mxu0 %vm6513_vm11, %v6478_v34  ;;  %v3896_v20 = vsel %vm330_vm1, 1.0, %v6453_v1  ;;  %v6532_v57 = vand.u32 4294901760, %v5357_v36  ;;  %vm6535_vm8 = vmmov %vm6525_vm13  ;;  %vm6540_vm11 = vcmp.eq.s32.totalorder %v4855_v59, %v4419_v6 }
  0xad   : > { %1623 = vmatprep.subr.mxu1 %v1622_v19  ;;  %1296 = vmatmul.mubr.f32.gmra.mxu0 %v4832_v27  ;;  %v5346_v19 = vsub.f32 %v3910_v40, %v3910_v40  ;;  %v3901_v40 = vsel %vm6525_vm13, 1.0, %v6453_v1  ;;  %vm6542_vm13 = vcmp.eq.s32.totalorder %v4855_v59, %v4422_v7 }
  0xae   : > { %1409 = vmatmul.mubr.f32.gmra.mxu1 %v4782_v60  ;;  %3992 = vmatprep.subr.msk.mxu0 %vm429_vm7, %v6478_v34  ;;  %v5389_v33 = vsub.f32 %v3901_v40, %v3901_v40  ;;  %v1675_v40 = vsub.f32 %v5309_v15, %v6527_v30  ;;  %v1687_v18 = vsub.f32 %v5357_v36, %v6532_v57 }
  0xaf   : > { %1629 = vmatpush1.msra.mxu1 %v1628_v38  ;;  %3993 = vmatpush1.msk.msra.mxu0 %vm428_vm12, %v6478_v34  ;;  %v1646_v38 = vand.u32 4294901760, %v1645_v63  ;;  %v3900_v63 = vsel %vm334_vm4, 1.0, %v6453_v1 }
  0xb0   : > { %1635 = vmatprep.subr.mxu1 %v1634_v9  ;;  %3994 = vmatprep.subr.msk.mxu0 %vm6526_vm0, %v6478_v34  ;;  %v1658_v9 = vand.u32 4294901760, %v1657_v13  ;;  %v1664_v13 = vand.u32 4294901760, %v1663_v55  ;;  %v5413_v42 = vsub.f32 %v3900_v63, %v3900_v63  ;;  %v5427_v55 = vsub.f32 %v3896_v20, %v3896_v20 }
  0xb1   : > { %1641 = vmatpush1.msra.mxu1 %v1640_v10  ;;  %1301 = vmatprep.mubr.f32.mxu0 %v6453_v1  ;;  %v3897_v10 = vsel %vm331_vm14, 1.0, %v6453_v1  ;;  %v6530_v63 = vand.u32 4294901760, %v5346_v19  ;;  %v6533_v20 = vand.u32 4294901760, %v5370_v28  ;;  %vm6543_vm0 = vcmp.eq.s32.totalorder %v4466_v22, %v4425_v8 }
  0xb2   : > { %1414 = vmatprep.mubr.f32.mxu1 %v6453_v1  ;;  %3995 = vmatpush1.msk.msra.mxu0 %vm6519_vm2, %v6478_v34  ;;  %v5420_v30 = vsub.f32 %v3897_v10, %v3897_v10  ;;  %v6456_v1 = vand.u32 4294901760, %v5389_v33  ;;  %v1676_v10 = vand.u32 4294901760, %v1675_v40  ;;  %v6534_v40 = vand.u32 4294901760, %v5378_v31 }
  0xb3   : > { %1303 = vmatmul.mubr.f32.gmra.mxu0 %v4846_v48  ;;  %1416 = vmatmul.mubr.f32.gmra.mxu1 %v4814_v52  ;;  %v1681_v24 = vsub.f32 %v5346_v19, %v6530_v63  ;;  %vm6544_vm2 = vcmp.eq.s32.totalorder %v4855_v59, %v4425_v8 }
  0xb4   : > { %3996 = vmatprep.subr.msk.mxu0 %vm6528_vm3, %v6478_v34  ;;  %1647 = vmatprep.subr.mxu1 %v1646_v38  ;;  %v1670_v38 = vand.u32 4294901760, %v1669_v37  ;;  %v1699_v57 = vsub.f32 %v5378_v31, %v6534_v40  ;;  %v1716_v63 = vand.u32 4294901760, %v5420_v30  ;;  %v1722_v37 = vand.u32 4294901760, %v5427_v55 }
  0xb5   : > { %3997 = vmatpush1.msk.msra.mxu0 %vm6529_vm5, %v6478_v34  ;;  %1653 = vmatpush1.msra.mxu1 %v1652_v32  ;;  %v6531_v32 = vmov 0.0   ;;  %v1688_v40 = vand.u32 4294901760, %v1687_v18  ;;  %vm6546_vm3 = vcmp.eq.s32.totalorder %v4935_v3, %v4422_v7  ;;  %vm6547_vm5 = vcmp.eq.s32.totalorder %v4941_v61, %v4422_v7 }
  0xb6   : > { %3998 = vmatprep.subr.msk.mxu0 %vm374_vm6, %v6478_v34  ;;  %1659 = vmatprep.subr.mxu1 %v1658_v9  ;;  %v1693_v9 = vsub.f32 %v5370_v28, %v6533_v20  ;;  %v1705_v20 = vsub.f32 %v5389_v33, %v6456_v1  ;;  %v1700_v18 = vand.u32 4294901760, %v1699_v57 }
  0xb7   : > { %1308 = vmatprep.mubr.f32.mxu0 %v6531_v32  ;;  %1421 = vmatprep.mubr.f32.mxu1 %v6531_v32 }
  0xb8   : > { %3999 = vmatpush1.msk.msra.mxu0 %vm373_vm10, %v6478_v34  ;;  %1665 = vmatpush1.msra.mxu1 %v1664_v13  ;;  %v1682_v13 = vand.u32 4294901760, %v1681_v24  ;;  %v1694_v24 = vand.u32 4294901760, %v1693_v9  ;;  %v1706_v9 = vand.u32 4294901760, %v1705_v20 }
  0xb9   : > { %1310 = vmatmul.mubr.f32.gmra.mxu0 %v4849_v54  ;;  %1423 = vmatmul.mubr.f32.gmra.mxu1 %v4832_v27 }
  0xba   : > { %4000 = vmatprep.subr.msk.mxu0 %vm6535_vm8, %v6478_v34  ;;  %1671 = vmatprep.subr.mxu1 %v1670_v38  ;;  %v6536_v38 = vand.u32 4294901760, %v5413_v42  ;;  %vm6548_vm8 = vcmp.eq.s32.totalorder %v4935_v3, %v4425_v8 }
  0xbb   : > { %4001 = vmatpush1.msk.msra.mxu0 %vm334_vm4, %v6478_v34  ;;  %1677 = vmatpush1.msra.mxu1 %v1676_v10  ;;  %v1717_v10 = vsub.f32 %v5420_v30, %v1716_v63 }
  0xbc   : > { %4002 = vmatprep.subr.msk.mxu0 %vm331_vm14, %v6478_v34  ;;  %1428 = vmatprep.mubr.f32.mxu1 %v6531_v32  ;;  %v1711_v1 = vsub.f32 %v5413_v42, %v6536_v38  ;;  %v1723_v38 = vsub.f32 %v5427_v55, %v1722_v37 }
  0xbd   : > { %4003 = vmatpush1.msk.msra.mxu0 %vm330_vm1, %v6478_v34  ;;  %1527 = vmatprep.mubr.f32.mxu0 %v6531_v32  ;;  %v1718_v57 = vand.u32 4294901760, %v1717_v10 }
  0xbe   : > { %1683 = vmatprep.subr.mxu1 %v1682_v13  ;;  %1430 = vmatmul.mubr.f32.gmra.mxu1 %v4846_v48  ;;  %v1712_v62 = vand.u32 4294901760, %v1711_v1  ;;  %v1724_v13 = vand.u32 4294901760, %v1723_v38  ;;  %v6537_v1 = vld [vmem:[#allocation11_spill] sm:$0xff] }
  0xbf   : > { %1533 = vmatmul.mubr.f32.vlgmr.msra.gmra.mxu0 %v4806_v43  ;;  %1689 = vmatpush1.msra.mxu1 %v1688_v40  ;;  %v6539_v43 = vld [vmem:[#allocation14_spill] sm:$0xff] }
  0xc0   : > { %1695 = vmatprep.subr.mxu1 %v1694_v24  ;;  %1435 = vmatprep.mubr.f32.mxu1 %v6531_v32 }
  0xc1   : > { %1701 = vmatpush1.msra.mxu1 %v1700_v18  ;;  %1538 = vmatprep.mubr.f32.mxu0 %v6531_v32 }
  0xc2   : > { %1437 = vmatmul.mubr.f32.gmra.mxu1 %v4849_v54  ;;  %1707 = vmatprep.subr.mxu1 %v1706_v9 }
  0xc3   : > { %1544 = vmatmul.mubr.f32.gmra.mxu0 %v4837_v23  ;;  %1815 = vmatprep.subr.mxu0 %v5128_v25  ;;  %v6545_v23 = vld [vmem:[#allocation16_spill] sm:$0xff] }
  0xc4   : > { %1713 = vmatpush1.msra.mxu1 %v1712_v62  ;;  %1818 = vmatpush1.msra.mxu0 %v5139_v45  ;;  %v6552_v62 = vand.u32 4294901760, %v5139_v45  ;;  %v6556_v45 = vand.u32 4294901760, %v5202_v14 }
  0xc5   : > { %1719 = vmatprep.subr.mxu1 %v1718_v57  ;;  %1821 = vmatprep.subr.mxu0 %v5162_v41 }
  0xc6   : > { %1549 = vmatprep.mubr.f32.mxu0 %v6531_v32  ;;  %1725 = vmatpush1.msra.mxu1 %v1724_v13 }
  0xc7   : > { %1758 = vmatprep.mubr.f32.mxu1 %v6531_v32  ;;  %1824 = vmatpush1.msra.mxu0 %v5183_v5 }
  0xc8   : > { %1555 = vmatmul.mubr.f32.gmra.mxu0 %v6537_v1  ;;  %1760 = vmatmul.mubr.f32.vlgmr.msra.gmra.mxu1 %v4747_v53 }
  0xc9   : > { %1827 = vmatprep.subr.mxu0 %v5192_v29  ;;  %1967 = vmatprep.subr.mxu1 %v5103_v44 }
  0xca   : > { %1830 = vmatpush1.msra.mxu0 %v5202_v14  ;;  %1969 = vmatpush1.msra.mxu1 %v5117_v58 }
  0xcb   : > { %1833 = vmatprep.subr.mxu0 %v5235_v47  ;;  %1560 = vmatprep.mubr.f32.mxu0 %v6531_v32 }
  0xcc   : > { %1765 = vmatprep.mubr.f32.mxu1 %v6531_v32  ;;  %1836 = vmatpush1.msra.mxu0 %v5237_v51 }
  0xcd   : > { %4004 = vmatprep.subr.msk.mxu1 %vm6538_vm9, %v6478_v34  ;;  %1566 = vmatmul.mubr.f32.gmra.mxu0 %v6539_v43  ;;  %vm6549_vm9 = vcmp.eq.s32.totalorder %v4941_v61, %v4425_v8 }
  0xce   : > { %1767 = vmatmul.mubr.f32.gmra.mxu1 %v4782_v60  ;;  %1839 = vmatprep.subr.mxu0 %v5251_v16 }
  0xcf   : > { %4005 = vmatpush1.msk.msra.mxu1 %vm6540_vm11, %v6478_v34  ;;  %1842 = vmatpush1.msra.mxu0 %v5277_v49  ;;  %vm6550_vm11 = vcmp.eq.s32.totalorder %v4989_v26, %v4425_v8 }
  0xd0   : > { %4006 = vmatprep.subr.msk.mxu1 %vm6541_vm15, %v6478_v34  ;;  %1845 = vmatprep.subr.mxu0 %v5300_v12  ;;  %vm6559_vm15 = vcmp.eq.s32.totalorder %v4466_v22, %v4419_v6 }
  0xd1   : > { %4007 = vmatpush1.msk.msra.mxu1 %vm6542_vm13, %v6478_v34  ;;  %1571 = vmatprep.mubr.f32.mxu0 %v6531_v32  ;;  %vm6561_vm13 = vcmp.eq.s32.totalorder %v4855_v59, %v4419_v6  ;;  %v6566_v6 = vand.u32 4294901760, %v5309_v15 }
  0xd2   : > { %1772 = vmatprep.mubr.f32.mxu1 %v6531_v32  ;;  %1848 = vmatpush1.msra.mxu0 %v5309_v15 }
  0xd3   : > { %1577 = vmatmul.mubr.f32.gmra.mxu0 %v4917_v11  ;;  %1774 = vmatmul.mubr.f32.gmra.mxu1 %v4814_v52  ;;  %v6553_v11 = vand.u32 4294901760, %v5162_v41  ;;  %v6557_v41 = vand.u32 4294901760, %v5235_v47 }
  0xd4   : > { %1851 = vmatprep.subr.mxu0 %v5346_v19  ;;  %4008 = vmatprep.subr.msk.mxu1 %vm6543_vm0, %v6478_v34  ;;  %vm6563_vm0 = vcmp.eq.s32.totalorder %v4466_v22, %v4422_v7 }
  0xd5   : > { %1854 = vmatpush1.msra.mxu0 %v5357_v36  ;;  %4009 = vmatpush1.msk.msra.mxu1 %vm6544_vm2, %v6478_v34  ;;  %vm6565_vm2 = vcmp.eq.s32.totalorder %v4855_v59, %v4422_v7 }
  0xd6   : > { %1857 = vmatprep.subr.mxu0 %v5370_v28  ;;  %4010 = vmatprep.subr.msk.mxu1 %vm429_vm7, %v6478_v34 }
  0xd7   : > { %1582 = vmatprep.mubr.f32.mxu0 %v6531_v32  ;;  %1779 = vmatprep.mubr.f32.mxu1 %v6531_v32 }
  0xd8   : > { %1860 = vmatpush1.msra.mxu0 %v5378_v31  ;;  %4011 = vmatpush1.msk.msra.mxu1 %vm428_vm12, %v6478_v34 }
  0xd9   : > { %1588 = vmatmul.mubr.f32.gmra.mxu0 %v6545_v23  ;;  %1781 = vmatmul.mubr.f32.gmra.mxu1 %v4832_v27 }
  0xda   : > { %1863 = vmatprep.subr.mxu0 %v5389_v33  ;;  %4012 = vmatprep.subr.msk.mxu1 %vm6546_vm3, %v6478_v34  ;;  %vm6568_vm3 = vcmp.eq.s32.totalorder %v4466_v22, %v4425_v8  ;;  %v6577_v22 = vand.u32 4294901760, %v5413_v42 }
  0xdb   : > { %1866 = vmatpush1.msra.mxu0 %v5413_v42  ;;  %4013 = vmatpush1.msk.msra.mxu1 %vm6547_vm5, %v6478_v34  ;;  %vm6570_vm5 = vcmp.eq.s32.totalorder %v4855_v59, %v4425_v8  ;;  %v6580_v59 = vld [vmem:[#allocation12_spill] sm:$0xff]  ;;  %v2426_v42 = vld [vmem:[%s6401_s2 + $0x18] sm:$0xff] }
  0xdc   : > { %1869 = vmatprep.subr.mxu0 %v5420_v30  ;;  %1786 = vmatprep.mubr.f32.mxu1 %v6531_v32 }
  0xdd   : > { %1872 = vmatpush1.msra.mxu0 %v5427_v55  ;;  %1905 = vmatprep.mubr.f32.mxu0 %v6531_v32 }
  0xde   : > { %4014 = vmatprep.subr.msk.mxu1 %vm6548_vm8, %v6478_v34  ;;  %1788 = vmatmul.mubr.f32.gmra.mxu1 %v4846_v48  ;;  %vm6578_vm8 = vcmp.eq.s32.totalorder %v4941_v61, %v4422_v7  ;;  %v2424_v61 = vld [vmem:[%s6401_s2 + $0x8] sm:$0xff] }
  0xdf   : > { %1908 = vmatmul.mubr.f32.vlgmr.msra.gmra.mxu0 %v4763_v0  ;;  %4015 = vmatpush1.msk.msra.mxu1 %vm6549_vm9, %v6478_v34  ;;  %v6551_v0 = vand.u32 4294901760, %v5128_v25  ;;  %v6555_v25 = vand.u32 4294901760, %v5192_v29  ;;  %v6575_v29 = vand.u32 4294901760, %v5389_v33 }
  0xe0   : > { %4016 = vmatprep.subr.msk.mxu1 %vm374_vm6, %v6478_v34  ;;  %1793 = vmatprep.mubr.f32.mxu1 %v6531_v32 }
  0xe1   : > { %4017 = vmatpush1.msk.msra.mxu1 %vm373_vm10, %v6478_v34  ;;  %1913 = vmatprep.mubr.f32.mxu0 %v6531_v32 }
  0xe2   : > { %1795 = vmatmul.mubr.f32.gmra.mxu1 %v4849_v54  ;;  %4018 = vmatprep.subr.msk.mxu1 %vm6550_vm11, %v6478_v34 }
  0xe3   : > { %1916 = vmatmul.mubr.f32.gmra.mxu0 %v4792_v50  ;;  %2108 = vmatprep.subr.mxu0 %v6551_v0  ;;  %v6554_v50 = vand.u32 4294901760, %v5183_v5  ;;  %v6573_v5 = vld [vmem:[#allocation13_spill] sm:$0xff] }
  0xe4   : > { %4019 = vmatpush1.msk.msra.mxu1 %vm334_vm4, %v6478_v34  ;;  %2112 = vmatpush1.msra.mxu0 %v6552_v62 }
  0xe5   : > { %4020 = vmatprep.subr.msk.mxu1 %vm331_vm14, %v6478_v34  ;;  %2116 = vmatprep.subr.mxu0 %v6553_v11 }
  0xe6   : > { %1921 = vmatprep.mubr.f32.mxu0 %v6531_v32  ;;  %4021 = vmatpush1.msk.msra.mxu1 %vm330_vm1, %v6478_v34 }
  0xe7   : > { %2038 = vmatprep.mubr.f32.mxu1 %v6531_v32  ;;  %2120 = vmatpush1.msra.mxu0 %v6554_v50 }
  0xe8   : > { %1924 = vmatmul.mubr.f32.gmra.mxu0 %v4830_v39  ;;  %2042 = vmatmul.mubr.f32.vlgmr.msra.gmra.mxu1 %v4777_v21  ;;  %v6558_v39 = vand.u32 4294901760, %v5237_v51  ;;  %v6560_v21 = vand.u32 4294901760, %v5251_v16 }
  0xe9   : > { %2124 = vmatprep.subr.mxu0 %v6555_v25  ;;  %2273 = vmatprep.subr.mxu1 %v5103_v44  ;;  %v6562_v44 = vand.u32 4294901760, %v5277_v49 }
  0xea   : > { %2128 = vmatpush1.msra.mxu0 %v6556_v45  ;;  %2275 = vmatpush1.msra.mxu1 %v5117_v58  ;;  %v6569_v58 = vand.u32 4294901760, %v5357_v36 }
  0xeb   : > { %2132 = vmatprep.subr.mxu0 %v6557_v41  ;;  %1929 = vmatprep.mubr.f32.mxu0 %v6531_v32 }
  0xec   : > { %2047 = vmatprep.mubr.f32.mxu1 %v6531_v32  ;;  %2136 = vmatpush1.msra.mxu0 %v6558_v39 }
  0xed   : > { %4022 = vmatprep.subr.msk.mxu1 %vm6559_vm15, %v6478_v34  ;;  %1932 = vmatmul.mubr.f32.gmra.mxu0 %v4844_v4  ;;  %v6564_v4 = vand.u32 4294901760, %v5300_v12 }
  0xee   : > { %2051 = vmatmul.mubr.f32.gmra.mxu1 %v4809_v56  ;;  %2140 = vmatprep.subr.mxu0 %v6560_v21  ;;  %v6567_v56 = vand.u32 4294901760, %v5346_v19 }
  0xef   : > { %4023 = vmatpush1.msk.msra.mxu1 %vm6561_vm13, %v6478_v34  ;;  %2144 = vmatpush1.msra.mxu0 %v6562_v44 }
  0xf0   : > { %4024 = vmatprep.subr.msk.mxu1 %vm6563_vm0, %v6478_v34  ;;  %2148 = vmatprep.subr.mxu0 %v6564_v4 }
  0xf1   : > { %4025 = vmatpush1.msk.msra.mxu1 %vm6565_vm2, %v6478_v34  ;;  %1937 = vmatprep.mubr.f32.mxu0 %v6531_v32 }
  0xf2   : > { %2056 = vmatprep.mubr.f32.mxu1 %v6531_v32  ;;  %2152 = vmatpush1.msra.mxu0 %v6566_v6 }
  0xf3   : > { %1940 = vmatmul.mubr.f32.gmra.mxu0 %v4864_v46  ;;  %2060 = vmatmul.mubr.f32.gmra.mxu1 %v4841_v35  ;;  %v6571_v46 = vand.u32 4294901760, %v5370_v28  ;;  %v6572_v35 = vand.u32 4294901760, %v5378_v31  ;;  %v6574_v28 = vld [vmem:[#allocation10_spill] sm:$0xff] }
  0xf4   : > { %2156 = vmatprep.subr.mxu0 %v6567_v56  ;;  %4026 = vmatprep.subr.msk.mxu1 %vm6568_vm3, %v6478_v34 }
  0xf5   : > { %2160 = vmatpush1.msra.mxu0 %v6569_v58  ;;  %4027 = vmatpush1.msk.msra.mxu1 %vm6570_vm5, %v6478_v34 }
  0xf6   : > { %2164 = vmatprep.subr.mxu0 %v6571_v46  ;;  %4028 = vmatprep.subr.msk.mxu1 %vm429_vm7, %v6478_v34  ;;  %vm6576_vm7 = vcmp.eq.s32.totalorder %v4935_v3, %v4422_v7  ;;  %v6581_v7 = vld [vmem:[#allocation15_spill] sm:$0xff] }
  0xf7   : > { %1945 = vmatprep.mubr.f32.mxu0 %v6531_v32  ;;  %2065 = vmatprep.mubr.f32.mxu1 %v6531_v32 }
  0xf8   : > { %2168 = vmatpush1.msra.mxu0 %v6572_v35  ;;  %4029 = vmatpush1.msk.msra.mxu1 %vm428_vm12, %v6478_v34  ;;  %vm6579_vm12 = vcmp.eq.s32.totalorder %v4935_v3, %v4425_v8  ;;  %v4250_v8 = vmov 0   ;;  %v2482_v3 = vld [vmem:[%s6403_s4 + $0x8] sm:$0xff] }
  0xf9   : > { %1948 = vmatmul.mubr.f32.gmra.mxu0 %v6573_v5  ;;  %2069 = vmatmul.mubr.f32.gmra.mxu1 %v6574_v28 }
  0xfa   : > { %2172 = vmatprep.subr.mxu0 %v6575_v29  ;;  %4030 = vmatprep.subr.msk.mxu1 %vm6576_vm7, %v6478_v34 }
  0xfb   : > { %2176 = vmatpush1.msra.mxu0 %v6577_v22  ;;  %4031 = vmatpush1.msk.msra.mxu1 %vm6578_vm8, %v6478_v34 }
  0xfc   : > { %2180 = vmatprep.subr.mxu0 %v1716_v63  ;;  %2074 = vmatprep.mubr.f32.mxu1 %v6531_v32 }
  0xfd   : > { %2184 = vmatpush1.msra.mxu0 %v1722_v37  ;;  %2217 = vmatprep.mubr.f32.mxu0 %v6531_v32 }
  0xfe   : > { %4032 = vmatprep.subr.msk.mxu1 %vm6579_vm12, %v6478_v34  ;;  %2078 = vmatmul.mubr.f32.gmra.mxu1 %v6580_v59 }
  0xff   : > { %2219 = vmatmul.mubr.f32.vlgmr.msra.gmra.mxu0 %v4747_v53  ;;  %4033 = vmatpush1.msk.msra.mxu1 %vm6549_vm9, %v6478_v34 }
 0x100   : > { %4034 = vmatprep.subr.msk.mxu1 %vm374_vm6, %v6478_v34  ;;  %2083 = vmatprep.mubr.f32.mxu1 %v6531_v32 }
 0x101   : > { %4035 = vmatpush1.msk.msra.mxu1 %vm373_vm10, %v6478_v34  ;;  %2224 = vmatprep.mubr.f32.mxu0 %v6531_v32 }
 0x102   : > { %2087 = vmatmul.mubr.f32.gmra.mxu1 %v6581_v7  ;;  %4036 = vmatprep.subr.msk.mxu1 %vm6550_vm11, %v6478_v34 }
 0x103   : > { %2226 = vmatmul.mubr.f32.gmra.mxu0 %v4782_v60  ;;  %4037 = vmatpush1.msk.msra.mxu1 %vm334_vm4, %v6478_v34  ;;  %vm2493_vm4 = vcmask 261120  }
 0x104   : > { %4038 = vmatprep.subr.msk.mxu1 %vm331_vm14, %v6478_v34  ;;  %2231 = vmatprep.mubr.f32.mxu0 %v6531_v32 }
 0x105   : > { %4039 = vmatpush1.msk.msra.mxu1 %vm330_vm1, %v6478_v34  ;;  %2344 = vmatprep.mubr.f32.mxu1 %v6531_v32  ;;  %v2423_v34 = vld [vmem:[%s6401_s2] sm:$0xff] }
 0x106   : > { %2346 = vmatmul.mubr.f32.vlgmr.msra.gmra.mxu1 %v4747_v53  ;;  %4101 = vset.pattern.permute.xlu1 %v4250_v8  ;;  %v2425_v53 = vld [vmem:[%s6401_s2 + $0x10] sm:$0xff] }
 0x107   : > { %2233 = vmatmul.mubr.f32.gmra.mxu0 %v4814_v52  ;;  %2434 = vperm.xlu1 %4101, %v2424_v61  }
 0x108   : > { %2238 = vmatprep.mubr.f32.mxu0 %v6531_v32  ;;  %2351 = vmatprep.mubr.f32.mxu1 %v6531_v32 }
 0x109   : > { %4100 = vset.pattern.permute.xlu0 %v4250_v8 }
 0x10a   : > { %2353 = vmatmul.mubr.f32.gmra.mxu1 %v4782_v60  ;;  %2444 = vperm.xlu0 %4100, %v2426_v42   ;;  %v2481_v60 = vld [vmem:[%s6403_s4] sm:$0xff] }
 0x10b   : > { %2240 = vmatmul.mubr.f32.gmra.mxu0 %v4832_v27  ;;  %2429 = vperm.xlu1 %4101, %v2423_v34  }
 0x10c   : > { %2245 = vmatprep.mubr.f32.mxu0 %v6531_v32  ;;  %2358 = vmatprep.mubr.f32.mxu1 %v6531_v32 }
 0x10e   : > { %2360 = vmatmul.mubr.f32.gmra.mxu1 %v4814_v52  ;;  %2439 = vperm.xlu0 %4100, %v2425_v53   ;;  %v3692_v52 = vld [vmem:[%s6404_s5] sm:$0xff] }
 0x10f   : > { %2247 = vmatmul.mubr.f32.gmra.mxu0 %v4846_v48  ;;  %2365 = vmatprep.mubr.f32.mxu1 %v6531_v32 }
 0x110   : > { %2252 = vmatprep.mubr.f32.mxu0 %v6531_v32  ;;  %2490 = vperm.xlu1 %4101, %v2482_v3  }
 0x112   : > { %2367 = vmatmul.mubr.f32.gmra.mxu1 %v4832_v27  ;;  %2485 = vperm.xlu0 %4100, %v2481_v60  }
 0x113   : > { %2254 = vmatmul.mubr.f32.gmra.mxu0 %v4849_v54  ;;  %2372 = vmatprep.mubr.f32.mxu1 %v6531_v32 }
 0x114   : > { %3701 = vperm.xlu1 %4101, %v3693_v17   ;;  %2572 = vmatprep.mubr.f32.mxu0 %v6531_v32 }
 0x116   : > { %2374 = vmatmul.mubr.f32.gmra.mxu1 %v4846_v48  ;;  %3696 = vperm.xlu0 %4100, %v3692_v52  }
 0x117   : > { %2379 = vmatprep.mubr.f32.mxu1 %v6531_v32 }
 0x11a   : > { %2381 = vmatmul.mubr.f32.gmra.mxu1 %v4849_v54 }
 0x11b   : > { %2699 = vmatprep.mubr.f32.mxu1 %v6531_v32 }
 0x122   : > { %v590_v27 = vpop.f32.mrf.mxu0 }
 0x124   : > { %v592_v26 = vpop.f32.mrf.mxu0 }
 0x126   : > { %v601_v14 = vpop.f32.mrf.mxu0 }
 0x128   : > { %v603_v31 = vpop.f32.mrf.mxu0  ;;  %v817_v47 = vpop.f32.mrf.mxu1 }
 0x129   : > { %v818_v51 = vadd.f32 %v817_v47, %v590_v27 }
 0x12a   : > { %v5791_v16 = vpop.f32.mrf.mxu0  ;;  %v819_v49 = vpop.f32.mrf.mxu1 }
 0x12b   : > { %v820_v36 = vadd.f32 %v819_v49, %v592_v26 }
 0x12c   : > { %v5793_v12 = vpop.f32.mrf.mxu0 }
 0x12d   : > { %v824_v48 = vpop.f32.mrf.mxu1 }
 0x12e   : > { %v5795_v15 = vpop.f32.mrf.mxu0  ;;  %v825_v19 = vadd.f32 %v824_v48, %v601_v14 }
 0x12f   : > { %v826_v33 = vpop.f32.mrf.mxu1 }
 0x130   : > { %v5797_v54 = vpop.f32.mrf.mxu0  ;;  %v827_v30 = vadd.f32 %v826_v33, %v603_v31 }
 0x133   : > { %v5799_v55 = vpop.f32.mrf.mxu0  ;;  %v5801_v37 = vpop.f32.mrf.mxu1 }
 0x135   : > { %v5803_v63 = vpop.f32.mrf.mxu0  ;;  %v5805_v20 = vpop.f32.mrf.mxu1 }
 0x139   : > { %v5807_v40 = vpop.f32.mrf.mxu0  ;;  %v5809_v24 = vpop.f32.mrf.mxu1 }
 0x13b   : > { %v5811_v18 = vpop.f32.mrf.mxu0  ;;  %v5813_v10 = vpop.f32.mrf.mxu1 }
 0x13e   : > { %v5815_v9 = vpop.f32.mrf.mxu1 }
 0x13f   : > { %v965_v38 = vpop.f32.mrf.mxu0 }
 0x140   : > { %v966_v57 = vadd.f32 %v965_v38, %v818_v51  ;;  %v5817_v13 = vpop.f32.mrf.mxu1 }
 0x141   : > { %v967_v1 = vpop.f32.mrf.mxu0 }
 0x142   : > { %v968_v43 = vadd.f32 %v967_v1, %v820_v36  ;;  %v5819_v23 = vpop.f32.mrf.mxu1 }
 0x143   : > { %v973_v0 = vpop.f32.mrf.mxu0 }
 0x144   : > { %v974_v62 = vadd.f32 %v973_v0, %v825_v19  ;;  %v5821_v11 = vpop.f32.mrf.mxu1 }
 0x145   : > { %v975_v50 = vpop.f32.mrf.mxu0 }
 0x146   : > { %v976_v25 = vadd.f32 %v975_v50, %v827_v30 }
 0x148   : > { %v5823_v45 = vpop.f32.mrf.mxu0  ;;  %v1099_v41 = vpop.f32.mrf.mxu1 }
 0x149   : > { %v1100_v39 = vadd.f32 %v1099_v41, %v966_v57 }
 0x14a   : > { %v5825_v21 = vpop.f32.mrf.mxu0  ;;  %v1101_v44 = vpop.f32.mrf.mxu1 }
 0x14b   : > { %v1102_v4 = vadd.f32 %v1101_v44, %v968_v43 }
 0x14d   : > { %v989_v6 = vpop.f32.mrf.mxu0 }
 0x14e   : > { %v1108_v56 = vpop.f32.mrf.mxu1 }
 0x14f   : > { %v1109_v58 = vadd.f32 %v1108_v56, %v974_v62  ;;  %v991_v46 = vpop.f32.mrf.mxu0 }
 0x150   : > { %v1110_v35 = vpop.f32.mrf.mxu1 }
 0x151   : > { %v1111_v5 = vadd.f32 %v1110_v35, %v976_v25 }
 0x153   : > { %v5827_v28 = vpop.f32.mrf.mxu0  ;;  %v5829_v29 = vpop.f32.mrf.mxu1 }
 0x155   : > { %v5831_v22 = vpop.f32.mrf.mxu0  ;;  %v5833_v59 = vpop.f32.mrf.mxu1 }
 0x159   : > { %v5835_v7 = vpop.f32.mrf.mxu0  ;;  %v1126_v61 = vpop.f32.mrf.mxu1 }
 0x15b   : > { %v5837_v8 = vpop.f32.mrf.mxu0  ;;  %v1128_v42 = vpop.f32.mrf.mxu1 }
 0x15e   : > { %v5839_v34 = vpop.f32.mrf.mxu1 }
 0x15f   : > { %v1276_v53 = vpop.f32.mrf.mxu0 }
 0x160   : > { %v1277_v3 = vadd.f32 %v1276_v53, %v1100_v39  ;;  %v5841_v60 = vpop.f32.mrf.mxu1 }
 0x161   : > { %v1278_v17 = vpop.f32.mrf.mxu0 }
 0x162   : > { %v1279_v52 = vadd.f32 %v1278_v17, %v1102_v4  ;;  %v5843_v27 = vpop.f32.mrf.mxu1 }
 0x163   : > { %v1283_v26 = vpop.f32.mrf.mxu0 }
 0x164   : > { %v1284_v14 = vadd.f32 %v1283_v26, %v1109_v58  ;;  %v5845_v31 = vpop.f32.mrf.mxu1 }
 0x165   : > { %v1285_v47 = vpop.f32.mrf.mxu0 }
 0x166   : > { %v1286_v51 = vadd.f32 %v1285_v47, %v1111_v5  ;;  %v839_v47 = vadd.f32 %v5809_v24, %v5795_v15  ;;  %v846_v15 = vadd.f32 %v5815_v9, %v5799_v55  ;;  %v853_v24 = vadd.f32 %v5819_v23, %v5807_v40 }
 0x168   : > { %v5847_v49 = vpop.f32.mrf.mxu0  ;;  %v1403_v36 = vpop.f32.mrf.mxu1  ;;  %v1006_v55 = vadd.f32 %v5835_v7, %v853_v24  ;;  %v998_v7 = vadd.f32 %v5827_v28, %v846_v15  ;;  %v2479_v24 = vld [vmem:[%s6402_s3] sm:$0xff] }
 0x169   : > { %v1404_v48 = vadd.f32 %v1403_v36, %v1277_v3 }
 0x16a   : > { %v5849_v19 = vpop.f32.mrf.mxu0  ;;  %v1405_v33 = vpop.f32.mrf.mxu1 }
 0x16b   : > { %v2387_v30 = vmul.f32 %v1404_v48, %v1404_v48  ;;  %v1406_v38 = vadd.f32 %v1405_v33, %v1279_v52  ;;  %v990_v33 = vadd.f32 %v989_v6, %v839_v47 }
 0x16d   : > { %v2391_v57 = vrot.slane %v2387_v30, 4  ;;  %v2388_v1 = vmul.f32 %v1406_v38, %v1406_v38  ;;  %v1297_v43 = vpop.f32.mrf.mxu0 }
 0x16e   : > { %v1410_v0 = vpop.f32.mrf.mxu1 }
 0x16f   : > { %v2392_v62 = vadd.f32 %v2391_v57, %v2387_v30  ;;  %v2397_v50 = vrot.slane %v2388_v1, 4  ;;  %v1411_v25 = vadd.f32 %v1410_v0, %v1284_v14  ;;  %v1299_v41 = vpop.f32.mrf.mxu0  ;;  %v841_v14 = vadd.f32 %v5813_v10, %v5797_v54 }
 0x170   : > { %v1412_v39 = vpop.f32.mrf.mxu1  ;;  %v848_v54 = vadd.f32 %v5817_v13, %v5803_v63  ;;  %v1127_v10 = vadd.f32 %v1126_v61, %v990_v33 }
 0x171   : > { %v2393_v44 = vrot.slane %v2392_v62, 2  ;;  %v2398_v4 = vadd.f32 %v2397_v50, %v2388_v1  ;;  %v1413_v56 = vadd.f32 %v1412_v39, %v1286_v51  ;;  %v832_v51 = vadd.f32 %v5801_v37, %v5791_v16 }
 0x172   : > { %v992_v30 = vadd.f32 %v991_v46, %v841_v14  ;;  %v855_v39 = vadd.f32 %v5821_v11, %v5811_v18  ;;  %v1298_v9 = vadd.f32 %v1297_v43, %v1127_v10  ;;  %v1000_v43 = vadd.f32 %v5831_v22, %v848_v54 }
 0x173   : > { %v2394_v58 = vadd.f32 %v2393_v44, %v2392_v62  ;;  %v2399_v35 = vrot.slane %v2398_v4, 2  ;;  %v5851_v5 = vpop.f32.mrf.mxu0  ;;  %v1417_v53 = vpop.f32.mrf.mxu1  ;;  %v834_v62 = vadd.f32 %v5805_v20, %v5793_v12  ;;  %v982_v12 = vadd.f32 %v5823_v45, %v832_v51 }
 0x174   : > { %v1129_v16 = vadd.f32 %v1128_v42, %v992_v30  ;;  %v1008_v61 = vadd.f32 %v5837_v8, %v855_v39  ;;  %v1145_v42 = vadd.f32 %v5843_v27, %v1006_v55 }
 0x175   : > { %v2400_v3 = vadd.f32 %v2399_v35, %v2398_v4  ;;  %v2395_v17 = vrot.slane %v2394_v58, 1  ;;  %v1306_v52 = vpop.f32.mrf.mxu0  ;;  %v1419_v26 = vpop.f32.mrf.mxu1  ;;  %v984_v20 = vadd.f32 %v5825_v21, %v834_v62  ;;  %v1118_v40 = vadd.f32 %v5829_v29, %v982_v12 }
 0x176   : > { %v1300_v13 = vadd.f32 %v1299_v41, %v1129_v16  ;;  %v1147_v8 = vadd.f32 %v5845_v31, %v1008_v61 }
 0x177   : > { %v2396_v36 = vadd.f32 %v2395_v17, %v2394_v58  ;;  %v2401_v48 = vrot.slane %v2400_v3, 1  ;;  %v1120_v23 = vadd.f32 %v5833_v59, %v984_v20  ;;  %v1291_v41 = vadd.f32 %v5847_v49, %v1118_v40  ;;  %v2480_v20 = vld [vmem:[%s6402_s3 + $0x8] sm:$0xff] }
 0x178   : > { %v1138_v17 = vadd.f32 %v5841_v60, %v1000_v43  ;;  %v2498_v40 = vsel %vm2493_vm4, %v2480_v20, 0 }
 0x179   : > { %v2415_v38 = vsub.f32 %v2396_v36, %v1411_v25  ;;  %v2402_v57 = vadd.f32 %v2401_v48, %v2400_v3  ;;  %v1311_v1 = vpop.f32.mrf.mxu0  ;;  %v1424_v0 = vpop.f32.mrf.mxu1  ;;  %v1293_v29 = vadd.f32 %v5849_v19, %v1120_v23  ;;  %v1136_v3 = vadd.f32 %v5839_v34, %v998_v7 }
 0x17a   : > { %v1425_v45 = vadd.f32 %v1424_v0, %v1298_v9  ;;  %v1312_v27 = vadd.f32 %v1311_v1, %v1145_v42  ;;  %v1418_v28 = vadd.f32 %v1417_v53, %v1291_v41  ;;  %v1307_v51 = vadd.f32 %v1306_v52, %v1138_v17 }
 0x17b   : > { %v2419_v37 = vmul.f32 0.5, %v2415_v38  ;;  %v2416_v6 = vsub.f32 %v2402_v57, %v1413_v56  ;;  %v1313_v46 = vpop.f32.mrf.mxu0  ;;  %v1426_v50 = vpop.f32.mrf.mxu1  ;;  %v1420_v14 = vadd.f32 %v1419_v26, %v1293_v29 }
 0x17c   : > { %v1427_v21 = vadd.f32 %v1426_v50, %v1300_v13  ;;  %v1314_v36 = vadd.f32 %v1313_v46, %v1147_v8  ;;  %v2495_v50 = vsel %vm2493_vm4, %v2479_v24, 0 }
 0x17d   : > { %v3744_v63 = vrot.slane %v2419_v37, 7  ;;  %v2420_v44 = vmul.f32 0.5, %v2416_v6 }
 0x17e   : > { %v1431_v4 = vpop.f32.mrf.mxu1 }
 0x17f   : > { %v5876_v18 = vadd.f32 %v3744_v63, %v1411_v25  ;;  %v3745_v11 = vrot.slane %v2420_v44, 7  ;;  %v1534_v58 = vpop.f32.mrf.mxu0  ;;  %v5925_v63 = vand.u32 4294901760, %v2495_v50 }
 0x180   : > { %v1433_v59 = vpop.f32.mrf.mxu1 }
 0x181   : > { %6582 = vst [vmem:[#allocation11_spill] sm:$0xff] %v5876_v18  ;;  %v5883_v35 = vadd.f32 %v3745_v11, %v1413_v56  ;;  %v1536_v25 = vpop.f32.mrf.mxu0  ;;  %v1305_v56 = vadd.f32 %v5851_v5, %v1136_v3  ;;  %v1434_v26 = vadd.f32 %v1433_v59, %v1307_v51 }
 0x182   : > { %v5887_v47 = vpop.permute.xlu1 %2434  ;;  %v1438_v22 = vpop.f32.mrf.mxu1 }
 0x183   : > { %6583 = vst [vmem:[#allocation14_spill] sm:$0xff] %v5883_v35  ;;  %v2451_v49 = vadd.f32 %v5887_v47, %v1425_v45  ;;  %v2452_v19 = vadd.f32 %v5887_v47, %v1427_v21  ;;  %v1439_v48 = vadd.f32 %v1438_v22, %v1312_v27  ;;  %v1545_v31 = vpop.f32.mrf.mxu0  ;;  %v1432_v53 = vadd.f32 %v1431_v4, %v1305_v56 }
 0x184   : > { %v1440_v33 = vpop.f32.mrf.mxu1  ;;  %v5935_v4 = vsub.f32 %v2495_v50, %v5925_v63  ;;  %v5937_v45 = vand.u32 4294901760, %v2498_v40 }
 0x185   : > { %v5892_v30 = vpop.permute.xlu0 %2444  ;;  %v1441_v34 = vadd.f32 %v1440_v33, %v1314_v36  ;;  %v1547_v60 = vpop.f32.mrf.mxu0  ;;  %4102 = vtanh.f32 %v2452_v19 }
 0x186   : > { %v5894_v38 = vpop.permute.xlu1 %2429  ;;  %v2459_v57 = vadd.f32 %v5892_v30, %v1439_v48  ;;  %4104 = vtanh.f32 %v2451_v49  ;;  %v5950_v27 = vand.u32 4294901760, %v5935_v4 }
 0x187   : > { %v2447_v1 = vadd.f32 %v5894_v38, %v1418_v28  ;;  %v2448_v0 = vadd.f32 %v5894_v38, %v1420_v14  ;;  %v2460_v5 = vadd.f32 %v5892_v30, %v1441_v34  ;;  %v5958_v28 = vsub.f32 %v2498_v40, %v5937_v45 }
 0x188   : > { %4106 = vtanh.f32 %v2459_v57  ;;  %v5900_v52 = vpop.f32.mrf.mxu0  ;;  %v1761_v62 = vpop.f32.mrf.mxu1 }
 0x189   : > { %4108 = vtanh.f32 %v2447_v1  ;;  %v5902_v15 = vpop.permute.xlu0 %2439  ;;  %v5904_v54 = vadd.f32 %v1761_v62, %v1534_v58 }
 0x18a   : > { %4110 = vtanh.f32 %v2448_v0  ;;  %v2455_v10 = vadd.f32 %v5902_v15, %v1432_v53  ;;  %v2456_v16 = vadd.f32 %v5902_v15, %v1434_v26  ;;  %v5911_v37 = vpop.f32.mrf.mxu0  ;;  %v1763_v6 = vpop.f32.mrf.mxu1  ;;  %v2576_v53 = vsub.f32 %v5935_v4, %v5950_v27 }
 0x18b   : > { %4112 = vtanh.f32 %v2460_v5  ;;  %v5913_v46 = vadd.f32 %v1763_v6, %v1536_v25  ;;  %v5994_v0 = vand.u32 4294901760, %v5958_v28 }
 0x18c   : > { %4114 = vtanh.f32 %v2455_v10 }
 0x18d   : > { %4116 = vtanh.f32 %v2456_v16  ;;  %v5916_v39 = vpop.f32.mrf.mxu0  ;;  %6584 = vst [vmem:[#allocation16_spill] sm:$0xff] %v5994_v0 }
 0x18e   : > { %v1768_v12 = vpop.f32.mrf.mxu1 }
 0x18f   : > { %v5921_v55 = vadd.f32 %v1768_v12, %v1545_v31  ;;  %v5923_v9 = vpop.f32.mrf.mxu0 }
 0x190   : > { %v1770_v13 = vpop.f32.mrf.mxu1 }
 0x191   : > { %v5927_v44 = vadd.f32 %v1770_v13, %v1547_v60  ;;  %v6016_v13 = vand.u32 4294901760, %v2576_v53 }
 0x192   : > { %v4103_v23 = vpop.eup %4102 }
 0x193   : > { %v5930_v61 = vpop.f32.mrf.mxu0  ;;  %v5932_v42 = vpop.f32.mrf.mxu1  ;;  %v5945_v29 = vand.u32 4294901760, %v4103_v23 }
 0x194   : > { %v4105_v11 = vpop.eup %4104 }
 0x195   : > { %v4107_v21 = vpop.eup %4106  ;;  %v5939_v58 = vpop.f32.mrf.mxu0  ;;  %v5947_v8 = vand.u32 4294901760, %v4105_v11  ;;  %v5972_v51 = vsub.f32 %v4103_v23, %v5945_v29 }
 0x196   : > { %v5941_v7 = vpop.f32.mrf.mxu1  ;;  %v4109_v43 = vpop.eup %4108  ;;  %v5943_v41 = vand.u32 4294901760, %v4107_v21 }
 0x197   : > { %v4111_v59 = vpop.eup %4110  ;;  %v5966_v19 = vand.u32 4294901760, %v4109_v43  ;;  %v5987_v57 = vsub.f32 %v4105_v11, %v5947_v8  ;;  %v6462_v12 = vand.u32 4294901760, %v5972_v51 }
 0x198   : > { %v4113_v25 = vpop.eup %4112  ;;  %v5952_v3 = vand.u32 4294901760, %v4111_v59  ;;  %v5955_v17 = vsub.f32 %v4107_v21, %v5943_v41 }
 0x199   : > { %v4115_v14 = vpop.eup %4114  ;;  %v5960_v22 = vpop.f32.mrf.mxu0  ;;  %v5964_v36 = vand.u32 4294901760, %v4113_v25  ;;  %v6005_v10 = vsub.f32 %v4109_v43, %v5966_v19 }
 0x19a   : > { %v5962_v49 = vpop.f32.mrf.mxu1  ;;  %v4117_v48 = vpop.eup %4116  ;;  %v5968_v31 = vand.u32 4294901760, %v4115_v14  ;;  %v6458_v56 = vand.u32 4294901760, %v5955_v17  ;;  %v5997_v5 = vsub.f32 %v4111_v59, %v5952_v3  ;;  %v2587_v59 = vsub.f32 %v5958_v28, %v5994_v0 }
 0x19b   : > { %v5974_v33 = vpop.f32.mrf.mxu0  ;;  %2525 = vmatprep.subr.mxu0 %v5964_v36  ;;  %v5979_v60 = vand.u32 4294901760, %v4117_v48  ;;  %v5984_v26 = vsub.f32 %v4113_v25, %v5964_v36 }
 0x19c   : > { %v5976_v34 = vpop.f32.mrf.mxu1  ;;  %2527 = vmatpush1.msra.mxu0 %v5943_v41  ;;  %v5991_v1 = vsub.f32 %v4115_v14, %v5968_v31  ;;  %v2628_v6 = vsub.f32 %v5955_v17, %v6458_v56 }
 0x19d   : > { %2529 = vmatprep.subr.mxu0 %v5979_v60  ;;  %v6459_v62 = vand.u32 4294901760, %v5984_v26  ;;  %v6002_v24 = vsub.f32 %v4117_v48, %v5979_v60 }
 0x19e   : > { %v6007_v16 = vpop.f32.mrf.mxu1  ;;  %2531 = vmatpush1.msra.mxu0 %v5968_v31  ;;  %v6461_v50 = vand.u32 4294901760, %v5991_v1  ;;  %v2629_v25 = vand.u32 4294901760, %v2628_v6  ;;  %v6053_v6 = vand.u32 4294901760, %v2587_v59 }
 0x19f   : > { %v1909_v20 = vpop.f32.mrf.mxu0  ;;  %2533 = vmatprep.subr.mxu0 %v5945_v29  ;;  %v2622_v40 = vsub.f32 %v5984_v26, %v6459_v62  ;;  %v6460_v23 = vand.u32 4294901760, %v6002_v24 }
 0x1a0   : > { %v1910_v21 = vadd.f32 %v1909_v20, %v5904_v54  ;;  %v6024_v43 = vpop.f32.mrf.mxu1  ;;  %2535 = vmatpush1.msra.mxu0 %v5947_v8  ;;  %v2640_v54 = vsub.f32 %v5991_v1, %v6461_v50  ;;  %v6585_v50 = vand.u32 4294901760, %v5987_v57 }
 0x1a1   : > { %v1911_v14 = vpop.f32.mrf.mxu0  ;;  %2537 = vmatprep.subr.mxu0 %v5952_v3  ;;  %v2623_v48 = vand.u32 4294901760, %v2622_v40  ;;  %v2634_v53 = vsub.f32 %v6002_v24, %v6460_v23  ;;  %v2646_v40 = vsub.f32 %v5972_v51, %v6462_v12  ;;  %v6586_v12 = vand.u32 4294901760, %v5997_v5 }
 0x1a2   : > { %v1912_v56 = vadd.f32 %v1911_v14, %v5913_v46  ;;  %v6039_v62 = vpop.f32.mrf.mxu1  ;;  %2539 = vmatpush1.msra.mxu0 %v5966_v19  ;;  %v2652_v20 = vsub.f32 %v5987_v57, %v6585_v50  ;;  %v6587_v50 = vand.u32 4294901760, %v6005_v10 }
 0x1a3   : > { %v1917_v11 = vpop.f32.mrf.mxu0  ;;  %2578 = vmatmul.mubr.f32.vlgmr.msra.gmra.mxu0 %v6016_v13  ;;  %2624 = vmatprep.subr.mxu1 %v2623_v48  ;;  %v2635_v23 = vand.u32 4294901760, %v2634_v53  ;;  %v2658_v2 = vsub.f32 %v5997_v5, %v6586_v12  ;;  %v2641_v48 = vand.u32 4294901760, %v2640_v54  ;;  %v2647_v59 = vand.u32 4294901760, %v2646_v40 }
 0x1a4   : > { %v1918_v46 = vadd.f32 %v1917_v11, %v5921_v55  ;;  %v6050_v14 = vpop.f32.mrf.mxu1  ;;  %2740 = vmatprep.subr.mxu0 %v5984_v26  ;;  %2630 = vmatpush1.msra.mxu1 %v2629_v25  ;;  %v2664_v55 = vsub.f32 %v6005_v10, %v6587_v50  ;;  %v2653_v12 = vand.u32 4294901760, %v2652_v20 }
 0x1a5   : > { %v1919_v35 = vpop.f32.mrf.mxu0  ;;  %2743 = vmatpush1.msra.mxu0 %v5955_v17  ;;  %2636 = vmatprep.subr.mxu1 %v2635_v23  ;;  %v2659_v23 = vand.u32 4294901760, %v2658_v2 }
 0x1a6   : > { %v1920_v11 = vadd.f32 %v1919_v35, %v5927_v44  ;;  %2746 = vmatprep.subr.mxu0 %v6002_v24  ;;  %2583 = vmatprep.mubr.f32.mxu0 %v6531_v32  ;;  %v2665_v35 = vand.u32 4294901760, %v2664_v55  ;;  %v6589_v55 = vand.u32 4294901760, %v5955_v17 }
 0x1a7   : > { %2642 = vmatpush1.msra.mxu1 %v2641_v48  ;;  %2749 = vmatpush1.msra.mxu0 %v5991_v1  ;;  %v6588_v48 = vand.u32 4294901760, %v5984_v26  ;;  %v6591_v26 = vand.u32 4294901760, %v5991_v1  ;;  %v6593_v1 = vand.u32 4294901760, %v5987_v57 }
 0x1a8   : > { %v6066_v25 = vpop.f32.mrf.mxu0  ;;  %v2043_v53 = vpop.f32.mrf.mxu1  ;;  %2589 = vmatmul.mubr.f32.gmra.mxu0 %v6053_v6  ;;  %2648 = vmatprep.subr.mxu1 %v2647_v59 }
 0x1a9   : > { %v6069_v54 = vadd.f32 %v2043_v53, %v1910_v21  ;;  %2752 = vmatprep.subr.mxu0 %v5972_v51  ;;  %2654 = vmatpush1.msra.mxu1 %v2653_v12  ;;  %v6590_v12 = vand.u32 4294901760, %v6002_v24 }
 0x1aa   : > { %v6072_v44 = vpop.f32.mrf.mxu0  ;;  %v2045_v40 = vpop.f32.mrf.mxu1  ;;  %2755 = vmatpush1.msra.mxu0 %v5987_v57  ;;  %2660 = vmatprep.subr.mxu1 %v2659_v23  ;;  %v6592_v23 = vand.u32 4294901760, %v5972_v51  ;;  %v6595_v51 = vand.u32 4294901760, %v6005_v10 }
 0x1ab   : > { %v6075_v20 = vadd.f32 %v2045_v40, %v1912_v56  ;;  %2758 = vmatprep.subr.mxu0 %v5997_v5  ;;  %2666 = vmatpush1.msra.mxu1 %v2665_v35  ;;  %v6594_v35 = vand.u32 4294901760, %v5997_v5 }
 0x1ac   : > { %2761 = vmatpush1.msra.mxu0 %v6005_v10  ;;  %2701 = vmatmul.mubr.f32.vlgmr.msra.gmra.mxu1 %v5925_v63 }
 0x1ad   : > { %v6080_v2 = vpop.f32.mrf.mxu0  ;;  %2794 = vmatprep.mubr.f32.mxu0 %v6531_v32  ;;  %2836 = vmatprep.subr.mxu1 %v5964_v36 }
 0x1ae   : > { %v2052_v21 = vpop.f32.mrf.mxu1  ;;  %2929 = vmatprep.subr.mxu0 %v6588_v48  ;;  %2797 = vmatmul.mubr.f32.vlgmr.msra.gmra.mxu0 %v5935_v4 }
 0x1af   : > { %v2053_v56 = vadd.f32 %v2052_v21, %v1918_v46  ;;  %v6087_v50 = vpop.f32.mrf.mxu0  ;;  %2838 = vmatpush1.msra.mxu1 %v5943_v41  ;;  %2933 = vmatpush1.msra.mxu0 %v6589_v55 }
 0x1b0   : > { %v2054_v59 = vpop.f32.mrf.mxu1  ;;  %2840 = vmatprep.subr.mxu1 %v5979_v60  ;;  %2937 = vmatprep.subr.mxu0 %v6590_v12 }
 0x1b1   : > { %v2055_v53 = vadd.f32 %v2054_v59, %v1920_v11  ;;  %2706 = vmatprep.mubr.f32.mxu1 %v6531_v32  ;;  %2842 = vmatpush1.msra.mxu1 %v5968_v31 }
 0x1b2   : > { %2941 = vmatpush1.msra.mxu0 %v6591_v26  ;;  %2708 = vmatmul.mubr.f32.gmra.mxu1 %v5937_v45 }
 0x1b3   : > { %v6100_v46 = vpop.f32.mrf.mxu0  ;;  %v6102_v17 = vpop.f32.mrf.mxu1  ;;  %2844 = vmatprep.subr.mxu1 %v5945_v29  ;;  %2945 = vmatprep.subr.mxu0 %v6592_v23 }
 0x1b4   : > { %2802 = vmatprep.mubr.f32.mxu0 %v6531_v32  ;;  %2846 = vmatpush1.msra.mxu1 %v5947_v8 }
 0x1b5   : > { %v6109_v24 = vpop.f32.mrf.mxu0  ;;  %v6111_v11 = vpop.f32.mrf.mxu1  ;;  %2949 = vmatpush1.msra.mxu0 %v6593_v1  ;;  %2848 = vmatprep.subr.mxu1 %v5952_v3  ;;  %v1778_v1 = vadd.f32 %v5941_v7, %v5911_v37 }
 0x1b6   : > { %2805 = vmatmul.mubr.f32.gmra.mxu0 %v5958_v28  ;;  %2953 = vmatprep.subr.mxu0 %v6594_v35 }
 0x1b7   : > { %2850 = vmatpush1.msra.mxu1 %v5966_v19  ;;  %2883 = vmatprep.mubr.f32.mxu1 %v6531_v32 }
 0x1b8   : > { %2957 = vmatpush1.msra.mxu0 %v6595_v51  ;;  %2887 = vmatmul.mubr.f32.vlgmr.msra.gmra.mxu1 %v5950_v27 }
 0x1b9   : > { %v6124_v40 = vpop.f32.mrf.mxu0  ;;  %v6126_v57 = vpop.f32.mrf.mxu1  ;;  %3030 = vmatprep.subr.mxu1 %v5964_v36  ;;  %2990 = vmatprep.mubr.f32.mxu0 %v6531_v32 }
 0x1ba   : > { %3032 = vmatpush1.msra.mxu1 %v5943_v41  ;;  %2992 = vmatmul.mubr.f32.vlgmr.msra.gmra.mxu0 %v5925_v63 }
 0x1bb   : > { %v6132_v5 = vpop.f32.mrf.mxu0  ;;  %v6134_v21 = vpop.f32.mrf.mxu1  ;;  %3034 = vmatprep.subr.mxu1 %v5979_v60  ;;  %2892 = vmatprep.mubr.f32.mxu1 %v6531_v32 }
 0x1bc   : > { %3036 = vmatpush1.msra.mxu1 %v5968_v31  ;;  %2997 = vmatprep.mubr.f32.mxu0 %v6531_v32 }
 0x1bd   : > { %2896 = vmatmul.mubr.f32.gmra.mxu1 %v5994_v0  ;;  %3038 = vmatprep.subr.mxu1 %v5945_v29 }
 0x1be   : > { %v6142_v36 = vpop.f32.mrf.mxu1  ;;  %3040 = vmatpush1.msra.mxu1 %v5947_v8  ;;  %2999 = vmatmul.mubr.f32.gmra.mxu0 %v5937_v45 }
 0x1bf   : > { %v2220_v41 = vpop.f32.mrf.mxu0  ;;  %3042 = vmatprep.subr.mxu1 %v5952_v3  ;;  %3077 = vmatprep.mubr.f32.mxu1 %v6531_v32 }
 0x1c0   : > { %v2221_v60 = vadd.f32 %v2220_v41, %v6069_v54  ;;  %v6149_v31 = vpop.f32.mrf.mxu1  ;;  %3044 = vmatpush1.msra.mxu1 %v5966_v19  ;;  %3164 = vmatprep.mubr.f32.mxu0 %v6531_v32 }
 0x1c1   : > { %v2222_v29 = vpop.f32.mrf.mxu0  ;;  %3079 = vmatmul.mubr.f32.vlgmr.msra.gmra.mxu1 %v5925_v63 }
 0x1c2   : > { %v2223_v8 = vadd.f32 %v2222_v29, %v6075_v20  ;;  %v6155_v10 = vpop.f32.mrf.mxu1  ;;  %3084 = vmatprep.mubr.f32.mxu1 %v6531_v32  ;;  %v1776_v20 = vadd.f32 %v5932_v42, %v5900_v52  ;;  %v1783_v52 = vadd.f32 %v5962_v49, %v5916_v39  ;;  %v1785_v42 = vadd.f32 %v5976_v34, %v5923_v9 }
 0x1c3   : > { %v2227_v3 = vpop.f32.mrf.mxu0 }
 0x1c4   : > { %v2228_v48 = vadd.f32 %v2227_v3, %v2053_v56  ;;  %v6158_v55 = vpop.f32.mrf.mxu1  ;;  %v1926_v41 = vadd.f32 %v6066_v25, %v1776_v20  ;;  %v1934_v39 = vadd.f32 %v6080_v2, %v1783_v52  ;;  %v1936_v34 = vadd.f32 %v6087_v50, %v1785_v42 }
 0x1c5   : > { %v2229_v54 = vpop.f32.mrf.mxu0  ;;  %3086 = vmatmul.mubr.f32.gmra.mxu1 %v5937_v45  ;;  %v1799_v50 = vadd.f32 %v6050_v14, %v5974_v33 }
 0x1c6   : > { %v2230_v59 = vadd.f32 %v2229_v54, %v2055_v53  ;;  %v2347_v19 = vpop.f32.mrf.mxu1  ;;  %3291 = vmatprep.mubr.f32.mxu1 %v6531_v32  ;;  %v1928_v53 = vadd.f32 %v6072_v44, %v1778_v1  ;;  %v2062_v37 = vadd.f32 %v6102_v17, %v1926_v41 }
 0x1c7   : > { %v2234_v12 = vpop.f32.mrf.mxu0  ;;  %v2348_v26 = vadd.f32 %v2347_v19, %v2221_v60 }
 0x1c8   : > { %v2349_v23 = vpop.f32.mrf.mxu1  ;;  %v2064_v60 = vadd.f32 %v6111_v11, %v1928_v53  ;;  %v2235_v49 = vadd.f32 %v2234_v12, %v2062_v37 }
 0x1c9   : > { %v2389_v35 = vmul.f32 %v2348_v26, %v2348_v26  ;;  %v2236_v56 = vpop.f32.mrf.mxu0  ;;  %v2350_v51 = vadd.f32 %v2349_v23, %v2223_v8  ;;  %v1792_v26 = vadd.f32 %v6024_v43, %v5939_v58  ;;  %v2073_v58 = vadd.f32 %v6134_v21, %v1936_v34 }
 0x1ca   : > { %v2354_v29 = vpop.f32.mrf.mxu1  ;;  %v2237_v20 = vadd.f32 %v2236_v56, %v2064_v60  ;;  %v1952_v21 = vadd.f32 %v6132_v5, %v1799_v50 }
 0x1cb   : > { %v2403_v3 = vrot.slane %v2389_v35, 4  ;;  %v2390_v54 = vmul.f32 %v2350_v51, %v2350_v51  ;;  %v2241_v18 = vpop.f32.mrf.mxu0  ;;  %v6168_v0 = vadd.f32 %v2354_v29, %v2228_v48  ;;  %v1790_v48 = vadd.f32 %v6007_v16, %v5930_v61 }
 0x1cc   : > { %v2356_v7 = vpop.f32.mrf.mxu1  ;;  %v2071_v61 = vadd.f32 %v6126_v57, %v1934_v39  ;;  %v1944_v56 = vadd.f32 %v6109_v24, %v1792_v26 }
 0x1cd   : > { %v2404_v25 = vadd.f32 %v2403_v3, %v2389_v35  ;;  %v2409_v8 = vrot.slane %v2390_v54, 4  ;;  %v2243_v19 = vpop.f32.mrf.mxu0  ;;  %v6176_v44 = vadd.f32 %v2356_v7, %v2230_v59  ;;  %v1797_v59 = vadd.f32 %v6039_v62, %v5960_v22 }
 0x1ce   : > { %v2361_v9 = vpop.f32.mrf.mxu1  ;;  %v1942_v1 = vadd.f32 %v6100_v46, %v1790_v48  ;;  %v2242_v22 = vadd.f32 %v2241_v18, %v2071_v61  ;;  %v2244_v53 = vadd.f32 %v2243_v19, %v2073_v58  ;;  %v2082_v18 = vadd.f32 %v6149_v31, %v1944_v56 }
 0x1cf   : > { %v2405_v17 = vrot.slane %v2404_v25, 2  ;;  %v2410_v11 = vadd.f32 %v2409_v8, %v2390_v54  ;;  %v2248_v23 = vpop.f32.mrf.mxu0  ;;  %v2362_v16 = vadd.f32 %v2361_v9, %v2235_v49  ;;  %v1950_v46 = vadd.f32 %v6124_v40, %v1797_v59 }
 0x1d0   : > { %v2363_v35 = vpop.f32.mrf.mxu1  ;;  %v2080_v41 = vadd.f32 %v6142_v36, %v1942_v1 }
 0x1d1   : > { %v2406_v43 = vadd.f32 %v2405_v17, %v2404_v25  ;;  %v2411_v2 = vrot.slane %v2410_v11, 2  ;;  %v2250_v12 = vpop.f32.mrf.mxu0  ;;  %v2364_v51 = vadd.f32 %v2363_v35, %v2237_v20  ;;  %v2449_v52 = vadd.f32 %v5894_v38, %v2362_v16 }
 0x1d2   : > { %v2368_v62 = vpop.f32.mrf.mxu1  ;;  %v2249_v54 = vadd.f32 %v2248_v23, %v2080_v41  ;;  %v2089_v40 = vadd.f32 %v6155_v10, %v1950_v46  ;;  %v2091_v25 = vadd.f32 %v6158_v55, %v1952_v21  ;;  %v2251_v26 = vadd.f32 %v2250_v12, %v2082_v18 }
 0x1d3   : > { %v2412_v57 = vadd.f32 %v2411_v2, %v2410_v11  ;;  %v2407_v29 = vrot.slane %v2406_v43, 1  ;;  %v2255_v3 = vpop.f32.mrf.mxu0  ;;  %v2369_v42 = vadd.f32 %v2368_v62, %v2242_v22  ;;  %v2450_v24 = vadd.f32 %v5894_v38, %v2364_v51 }
 0x1d4   : > { %v2370_v37 = vpop.f32.mrf.mxu1  ;;  %4118 = vtanh.f32 %v2449_v52  ;;  %v2256_v39 = vadd.f32 %v2255_v3, %v2089_v40 }
 0x1d5   : > { %v2408_v33 = vadd.f32 %v2407_v29, %v2406_v43  ;;  %v2413_v14 = vrot.slane %v2412_v57, 1  ;;  %v2371_v36 = vadd.f32 %v2370_v37, %v2244_v53  ;;  %v2453_v7 = vadd.f32 %v5887_v47, %v2369_v42  ;;  %v2257_v19 = vpop.f32.mrf.mxu0 }
 0x1d6   : > { %v2375_v60 = vpop.f32.mrf.mxu1  ;;  %4120 = vtanh.f32 %v2450_v24  ;;  %v2258_v34 = vadd.f32 %v2257_v19, %v2091_v25 }
 0x1d7   : > { %v2417_v5 = vsub.f32 %v2408_v33, %v6168_v0  ;;  %v2414_v8 = vadd.f32 %v2413_v14, %v2412_v57  ;;  %v2376_v48 = vadd.f32 %v2375_v60, %v2249_v54  ;;  %v2454_v38 = vadd.f32 %v5887_v47, %v2371_v36 }
 0x1d8   : > { %v2377_v49 = vpop.f32.mrf.mxu1  ;;  %4122 = vtanh.f32 %v2453_v7 }
 0x1d9   : > { %v2421_v9 = vmul.f32 0.5, %v2417_v5  ;;  %v2418_v31 = vsub.f32 %v2414_v8, %v6176_v44  ;;  %v2457_v10 = vadd.f32 %v5902_v15, %v2376_v48  ;;  %v2378_v55 = vadd.f32 %v2377_v49, %v2251_v26 }
 0x1da   : > { %v2382_v17 = vpop.f32.mrf.mxu1 }
 0x1db   : > { %v3746_v20 = vrot.slane %v2421_v9, 7  ;;  %v2422_v11 = vmul.f32 0.5, %v2418_v31  ;;  %4124 = vtanh.f32 %v2457_v10  ;;  %v2383_v23 = vadd.f32 %v2382_v17, %v2256_v39 }
 0x1dc   : > { %4126 = vtanh.f32 %v2454_v38  ;;  %v2458_v59 = vadd.f32 %v5902_v15, %v2378_v55  ;;  %v2384_v1 = vpop.f32.mrf.mxu1 }
 0x1dd   : > { %v6207_v47 = vadd.f32 %v3746_v20, %v6168_v0  ;;  %v3747_v61 = vrot.slane %v2422_v11, 7  ;;  %v2461_v16 = vadd.f32 %v5892_v30, %v2383_v23  ;;  %v2385_v35 = vadd.f32 %v2384_v1, %v2258_v34 }
 0x1de   : > { %4128 = vtanh.f32 %v2458_v59 }
 0x1df   : > { %v6211_v58 = vadd.f32 %v3747_v61, %v6176_v44  ;;  %4130 = vtanh.f32 %v2461_v16  ;;  %v2462_v43 = vadd.f32 %v5892_v30, %v2385_v35 }
 0x1e1   : > { %4132 = vtanh.f32 %v2462_v43  ;;  %v4119_v2 = vpop.eup %4118  ;;  %v6319_v43 = vpop.permute.xlu0 %2485 }
 0x1e2   : > { %v6231_v3 = vand.u32 4294901760, %v4119_v2 }
 0x1e3   : > { %v4121_v12 = vpop.eup %4120 }
 0x1e4   : > { %v6224_v30 = vand.u32 4294901760, %v4121_v12  ;;  %v6256_v40 = vsub.f32 %v4119_v2, %v6231_v3 }
 0x1e5   : > { %v4123_v51 = vpop.eup %4122 }
 0x1e6   : > { %v6222_v44 = vand.u32 4294901760, %v4123_v51  ;;  %v6251_v24 = vsub.f32 %v4121_v12, %v6224_v30  ;;  %v3255_v39 = vand.u32 4294901760, %v6256_v40 }
 0x1e8   : > { %v4125_v15 = vpop.eup %4124  ;;  %v6247_v14 = vsub.f32 %v4123_v51, %v6222_v44  ;;  %v3249_v19 = vand.u32 4294901760, %v6251_v24  ;;  %v3256_v55 = vsub.f32 %v6256_v40, %v3255_v39 }
 0x1e9   : > { %v4127_v50 = vpop.eup %4126  ;;  %v6214_v0 = vand.u32 4294901760, %v4125_v15 }
 0x1ea   : > { %v6218_v62 = vand.u32 4294901760, %v4127_v50  ;;  %v3243_v8 = vand.u32 4294901760, %v6247_v14  ;;  %v3250_v10 = vsub.f32 %v6251_v24, %v3249_v19  ;;  %v3257_v11 = vand.u32 4294901760, %v3256_v55 }
 0x1eb   : > { %v4129_v56 = vpop.eup %4128  ;;  %v6237_v54 = vsub.f32 %v4125_v15, %v6214_v0  ;;  %v6323_v15 = vpop.permute.xlu1 %2490 }
 0x1ec   : > { %v4131_v41 = vpop.eup %4130  ;;  %v6216_v22 = vand.u32 4294901760, %v4129_v56  ;;  %v6240_v52 = vsub.f32 %v4127_v50, %v6218_v62  ;;  %v3244_v31 = vsub.f32 %v6247_v14, %v3243_v8  ;;  %v3251_v20 = vand.u32 4294901760, %v3250_v10 }
 0x1ed   : > { %v6220_v46 = vand.u32 4294901760, %v4131_v41  ;;  %v3231_v18 = vand.u32 4294901760, %v6237_v54 }
 0x1ee   : > { %v4133_v57 = vpop.eup %4132  ;;  %v6227_v29 = vsub.f32 %v4129_v56, %v6216_v22  ;;  %v3237_v60 = vand.u32 4294901760, %v6240_v52 }
 0x1ef   : > { %v6229_v53 = vand.u32 4294901760, %v4133_v57  ;;  %v6234_v21 = vsub.f32 %v4131_v41, %v6220_v46  ;;  %v3232_v26 = vsub.f32 %v6237_v54, %v3231_v18  ;;  %v6329_v10 = vpop.permute.xlu1 %3701 }
 0x1f0   : > { %v3225_v33 = vand.u32 4294901760, %v6227_v29  ;;  %v3238_v49 = vsub.f32 %v6240_v52, %v3237_v60 }
 0x1f1   : > { %3117 = vmatprep.subr.mxu0 %v6229_v53  ;;  %v3212_v42 = vsub.f32 %v4133_v57, %v6229_v53  ;;  %v3219_v37 = vand.u32 4294901760, %v6234_v21  ;;  %v3233_v34 = vand.u32 4294901760, %v3232_v26 }
 0x1f2   : > { %3119 = vmatpush1.msra.mxu0 %v6220_v46  ;;  %v3226_v5 = vsub.f32 %v6227_v29, %v3225_v33  ;;  %v3239_v17 = vand.u32 4294901760, %v3238_v49 }
 0x1f3   : > { %3121 = vmatprep.subr.mxu0 %v6216_v22  ;;  %v3213_v36 = vand.u32 4294901760, %v3212_v42  ;;  %v3220_v7 = vsub.f32 %v6234_v21, %v3219_v37 }
 0x1f4   : > { %3123 = vmatpush1.msra.mxu0 %v6214_v0  ;;  %v3227_v9 = vand.u32 4294901760, %v3226_v5 }
 0x1f5   : > { %3125 = vmatprep.subr.mxu0 %v6218_v62  ;;  %v3214_v25 = vsub.f32 %v3212_v42, %v3213_v36  ;;  %v3221_v38 = vand.u32 4294901760, %v3220_v7 }
 0x1f6   : > { %3127 = vmatpush1.msra.mxu0 %v6222_v44 }
 0x1f7   : > { %3129 = vmatprep.subr.mxu0 %v6224_v30  ;;  %v3215_v48 = vand.u32 4294901760, %v3214_v25 }
 0x1f8   : > { %3131 = vmatpush1.msra.mxu0 %v6231_v3 }
 0x1f9   : > { %3170 = vmatmul.mubr.f32.vlgmr.msra.gmra.mxu0 %v6016_v13  ;;  %3216 = vmatprep.subr.mxu1 %v3215_v48  ;;  %v3245_v13 = vand.u32 4294901760, %v3244_v31  ;;  %v6327_v31 = vpop.permute.xlu0 %3696 }
 0x1fa   : > { %3332 = vmatprep.subr.mxu0 %v3212_v42  ;;  %3222 = vmatpush1.msra.mxu1 %v3221_v38 }
 0x1fb   : > { %3335 = vmatpush1.msra.mxu0 %v6234_v21  ;;  %3228 = vmatprep.subr.mxu1 %v3227_v9 }
 0x1fc   : > { %3338 = vmatprep.subr.mxu0 %v6227_v29  ;;  %3175 = vmatprep.mubr.f32.mxu0 %v6531_v32 }
 0x1fd   : > { %3234 = vmatpush1.msra.mxu1 %v3233_v34  ;;  %3341 = vmatpush1.msra.mxu0 %v6237_v54 }
 0x1fe   : > { %3181 = vmatmul.mubr.f32.gmra.mxu0 %v6053_v6  ;;  %3240 = vmatprep.subr.mxu1 %v3239_v17 }
 0x1ff   : > { %3344 = vmatprep.subr.mxu0 %v6240_v52  ;;  %3246 = vmatpush1.msra.mxu1 %v3245_v13 }
 0x200   : > { %3347 = vmatpush1.msra.mxu0 %v6247_v14  ;;  %3252 = vmatprep.subr.mxu1 %v3251_v20 }
 0x201   : > { %3350 = vmatprep.subr.mxu0 %v6251_v24  ;;  %3258 = vmatpush1.msra.mxu1 %v3257_v11 }
 0x202   : > { %3353 = vmatpush1.msra.mxu0 %v6256_v40  ;;  %3293 = vmatmul.mubr.f32.vlgmr.msra.gmra.mxu1 %v5925_v63 }
 0x203   : > { %3386 = vmatprep.mubr.f32.mxu0 %v6531_v32  ;;  %3428 = vmatprep.subr.mxu1 %v6229_v53 }
 0x204   : > { %3521 = vmatprep.subr.mxu0 %v3213_v36  ;;  %3389 = vmatmul.mubr.f32.vlgmr.msra.gmra.mxu0 %v5935_v4  ;;  %v6596_v4 = vld [vmem:[#allocation16_spill] sm:$0xff] }
 0x205   : > { %3430 = vmatpush1.msra.mxu1 %v6220_v46  ;;  %3525 = vmatpush1.msra.mxu0 %v3219_v37 }
 0x206   : > { %3432 = vmatprep.subr.mxu1 %v6216_v22  ;;  %3529 = vmatprep.subr.mxu0 %v3225_v33 }
 0x207   : > { %3298 = vmatprep.mubr.f32.mxu1 %v6531_v32  ;;  %3434 = vmatpush1.msra.mxu1 %v6214_v0 }
 0x208   : > { %3533 = vmatpush1.msra.mxu0 %v3231_v18  ;;  %3300 = vmatmul.mubr.f32.gmra.mxu1 %v5937_v45 }
 0x209   : > { %3436 = vmatprep.subr.mxu1 %v6218_v62  ;;  %3537 = vmatprep.subr.mxu0 %v3237_v60 }
 0x20a   : > { %3394 = vmatprep.mubr.f32.mxu0 %v6531_v32  ;;  %3438 = vmatpush1.msra.mxu1 %v6222_v44 }
 0x20b   : > { %3541 = vmatpush1.msra.mxu0 %v3243_v8  ;;  %3440 = vmatprep.subr.mxu1 %v6224_v30 }
 0x20c   : > { %3397 = vmatmul.mubr.f32.gmra.mxu0 %v5958_v28  ;;  %3545 = vmatprep.subr.mxu0 %v3249_v19 }
 0x20d   : > { %3442 = vmatpush1.msra.mxu1 %v6231_v3  ;;  %3475 = vmatprep.mubr.f32.mxu1 %v6531_v32 }
 0x20e   : > { %3549 = vmatpush1.msra.mxu0 %v3255_v39  ;;  %3479 = vmatmul.mubr.f32.vlgmr.msra.gmra.mxu1 %v5950_v27 }
 0x20f   : > { %3622 = vmatprep.subr.mxu1 %v6229_v53  ;;  %3582 = vmatprep.mubr.f32.mxu0 %v6531_v32 }
 0x210   : > { %3624 = vmatpush1.msra.mxu1 %v6220_v46  ;;  %3584 = vmatmul.mubr.f32.vlgmr.msra.gmra.mxu0 %v5925_v63 }
 0x211   : > { %3626 = vmatprep.subr.mxu1 %v6216_v22  ;;  %3484 = vmatprep.mubr.f32.mxu1 %v6531_v32 }
 0x212   : > { %3628 = vmatpush1.msra.mxu1 %v6214_v0  ;;  %3589 = vmatprep.mubr.f32.mxu0 %v6531_v32 }
 0x213   : > { %3488 = vmatmul.mubr.f32.gmra.mxu1 %v6596_v4  ;;  %3630 = vmatprep.subr.mxu1 %v6218_v62 }
 0x214   : > { %3632 = vmatpush1.msra.mxu1 %v6222_v44  ;;  %3591 = vmatmul.mubr.f32.gmra.mxu0 %v5937_v45 }
 0x215   : > { %3634 = vmatprep.subr.mxu1 %v6224_v30  ;;  %3669 = vmatprep.mubr.f32.mxu1 %v6531_v32 }
 0x216   : > { %3636 = vmatpush1.msra.mxu1 %v6231_v3 }
 0x217   : > { %3671 = vmatmul.mubr.f32.vlgmr.msra.gmra.mxu1 %v5925_v63 }
 0x218   : > { %3676 = vmatprep.mubr.f32.mxu1 %v6531_v32 }
 0x21b   : > { %3678 = vmatmul.mubr.f32.gmra.mxu1 %v5937_v45 }
 0x263   : > { %v2579_v27 = vpop.f32.mrf.mxu0 }
 0x264   : > { %v2580_v2 = vadd.f32 %v2579_v27, %v6319_v43 }
 0x265   : > { %v2581_v28 = vpop.f32.mrf.mxu0 }
 0x266   : > { %v2582_v63 = vadd.f32 %v2581_v28, %v6319_v43 }
 0x268   : > { %v2590_v6 = vpop.f32.mrf.mxu0 }
 0x269   : > { %v2591_v45 = vadd.f32 %v2590_v6, %v6323_v15 }
 0x26a   : > { %v2592_v23 = vpop.f32.mrf.mxu0 }
 0x26b   : > { %v2593_v41 = vadd.f32 %v2592_v23, %v6323_v15 }
 0x26c   : > { %v2702_v59 = vpop.f32.mrf.mxu1 }
 0x26d   : > { %v2703_v51 = vadd.f32 %v2702_v59, %v2580_v2 }
 0x26e   : > { %v2704_v1 = vpop.f32.mrf.mxu1  ;;  %v2798_v61 = vpop.f32.mrf.mxu0 }
 0x26f   : > { %v2705_v50 = vadd.f32 %v2704_v1, %v2582_v63  ;;  %v2799_v22 = vadd.f32 %v2798_v61, %v2703_v51  ;;  %v6597_v51 = vld [vmem:[#allocation11_spill] sm:$0xff] }
 0x270   : > { %v2800_v35 = vpop.f32.mrf.mxu0 }
 0x271   : > { %v2801_v57 = vadd.f32 %v2800_v35, %v2705_v50  ;;  %v6598_v50 = vld [vmem:[#allocation14_spill] sm:$0xff] }
 0x272   : > { %v2709_v16 = vpop.f32.mrf.mxu1 }
 0x273   : > { %v2710_v62 = vadd.f32 %v2709_v16, %v2591_v45  ;;  %v6336_v45 = vstv %s3760_s25 }
 0x274   : > { %v2711_v12 = vpop.f32.mrf.mxu1 }
 0x275   : > { %v2712_v30 = vadd.f32 %v2711_v12, %v2593_v41 }
 0x276   : > { %v2806_v32 = vpop.f32.mrf.mxu0 }
 0x277   : > { %v2807_v21 = vadd.f32 %v2806_v32, %v2710_v62 }
 0x278   : > { %v2808_v56 = vpop.f32.mrf.mxu0  ;;  %v2888_v0 = vpop.f32.mrf.mxu1 }
 0x279   : > { %v2889_v29 = vadd.f32 %v2888_v0, %v2799_v22  ;;  %v2809_v37 = vadd.f32 %v2808_v56, %v2712_v30 }
 0x27a   : > { %v2890_v46 = vpop.f32.mrf.mxu1  ;;  %v2993_v44 = vpop.f32.mrf.mxu0 }
 0x27b   : > { %v2891_v54 = vadd.f32 %v2890_v46, %v2801_v57  ;;  %v2994_v33 = vadd.f32 %v2993_v44, %v2889_v29 }
 0x27c   : > { %v2995_v53 = vpop.f32.mrf.mxu0 }
 0x27d   : > { %v2897_v3 = vpop.f32.mrf.mxu1  ;;  %v2996_v36 = vadd.f32 %v2995_v53, %v2891_v54 }
 0x27e   : > { %v3000_v42 = vpop.f32.mrf.mxu0  ;;  %v2898_v14 = vadd.f32 %v2897_v3, %v2807_v21 }
 0x27f   : > { %v2899_v52 = vpop.f32.mrf.mxu1 }
 0x280   : > { %v2900_v18 = vadd.f32 %v2899_v52, %v2809_v37  ;;  %v3002_v7 = vpop.f32.mrf.mxu0  ;;  %v3001_v25 = vadd.f32 %v3000_v42, %v2898_v14 }
 0x281   : > { %v3080_v24 = vpop.f32.mrf.mxu1 }
 0x282   : > { %v3081_v40 = vadd.f32 %v3080_v24, %v2994_v33  ;;  %v3003_v19 = vadd.f32 %v3002_v7, %v2900_v18 }
 0x283   : > { %v3082_v60 = vpop.f32.mrf.mxu1 }
 0x284   : > { %v3083_v5 = vadd.f32 %v3082_v60, %v2996_v36  ;;  %4134 = vtanh.f32 %v3081_v40 }
 0x285   : > { %v3087_v8 = vpop.f32.mrf.mxu1 }
 0x286   : > { %v3088_v48 = vadd.f32 %v3087_v8, %v3001_v25  ;;  %4136 = vtanh.f32 %v3083_v5 }
 0x287   : > { %v3089_v26 = vpop.f32.mrf.mxu1 }
 0x288   : > { %4138 = vtanh.f32 %v3088_v48  ;;  %v3090_v39 = vadd.f32 %v3089_v26, %v3003_v19 }
 0x28a   : > { %4140 = vtanh.f32 %v3090_v39 }
 0x291   : > { %v4135_v38 = vpop.eup %4134 }
 0x292   : > { %v3704_v34 = vmul.f32 %v4135_v38, %v6327_v31 }
 0x293   : > { %v4137_v49 = vpop.eup %4136 }
 0x294   : > { %v3705_v13 = vmul.f32 %v4137_v49, %v6327_v31 }
 0x295   : > { %v4139_v9 = vpop.eup %4138 }
 0x296   : > { %v3708_v55 = vmul.f32 %v4139_v9, %v6329_v10 }
 0x297   : > { %v4141_v17 = vpop.eup %4140 }
 0x298   : > { %v3712_v20 = vadd.f32 %v3708_v55, %v3704_v34  ;;  %v3709_v11 = vmul.f32 %v4141_v17, %v6329_v10 }
 0x29a   : > { %v3713_v4 = vrot.slane %v3712_v20, 4  ;;  %v3719_v27 = vadd.f32 %v3709_v11, %v3705_v13 }
 0x29c   : > { %v3714_v28 = vadd.f32 %v3713_v4, %v3712_v20  ;;  %v3720_v6 = vrot.slane %v3719_v27, 4 }
 0x29e   : > { %v3715_v23 = vrot.slane %v3714_v28, 2  ;;  %v3721_v59 = vadd.f32 %v3720_v6, %v3719_v27 }
 0x2a0   : > { %v3716_v1 = vadd.f32 %v3715_v23, %v3714_v28  ;;  %v3722_v61 = vrot.slane %v3721_v59, 2 }
 0x2a2   : > { %v3717_v16 = vrot.slane %v3716_v1, 1  ;;  %v3723_v35 = vadd.f32 %v3722_v61, %v3721_v59 }
 0x2a4   : > { %v3718_v2 = vadd.f32 %v3717_v16, %v3716_v1  ;;  %v3724_v12 = vrot.slane %v3723_v35, 1 }
 0x2a6   : > { %v3725_v63 = vadd.f32 %v3724_v12, %v3723_v35  ;;  %v3756_v32 = vadd.f32 %v6597_v51, %v3718_v2 }
 0x2a8   : > { %v3757_v56 = vadd.f32 %v6598_v50, %v3725_v63  ;;  %v6340_v0 = vadd.f32 %v6336_v45, %v3756_v32 }
 0x2aa   : > { %v6343_v41 = vadd.f32 %v6336_v45, %v3757_v56 }
 0x2ac   : > { %v3770_v22 = vcombine.low %v6340_v0, %v6343_v41 }
 0x2b9   : > { %v3171_v62 = vpop.f32.mrf.mxu0 }
 0x2ba   : > { %v3172_v54 = vadd.f32 %v3171_v62, %v6319_v43 }
 0x2bb   : > { %v3173_v46 = vpop.f32.mrf.mxu0 }
 0x2bc   : > { %v3174_v42 = vadd.f32 %v3173_v46, %v6319_v43 }
 0x2be   : > { %v3182_v44 = vpop.f32.mrf.mxu0 }
 0x2bf   : > { %v3183_v14 = vadd.f32 %v3182_v44, %v6323_v15 }
 0x2c0   : > { %v3184_v57 = vpop.f32.mrf.mxu0 }
 0x2c1   : > { %v3185_v40 = vadd.f32 %v3184_v57, %v6323_v15 }
 0x2c2   : > { %v3294_v30 = vpop.f32.mrf.mxu1 }
 0x2c3   : > { %v3295_v37 = vadd.f32 %v3294_v30, %v3172_v54 }
 0x2c4   : > { %v3296_v29 = vpop.f32.mrf.mxu1  ;;  %v3390_v53 = vpop.f32.mrf.mxu0 }
 0x2c5   : > { %v3297_v24 = vadd.f32 %v3296_v29, %v3174_v42  ;;  %v3391_v7 = vadd.f32 %v3390_v53, %v3295_v37  ;;  %v4251_v42 = vmov 1966171168  }
 0x2c6   : > { %v3392_v21 = vpop.f32.mrf.mxu0  ;;  %v3773_v37 = vunpack.c.l.s4 %v4251_v42 }
 0x2c7   : > { %v3393_v8 = vadd.f32 %v3392_v21, %v3297_v24 }
 0x2c8   : > { %v3301_v3 = vpop.f32.mrf.mxu1 }
 0x2c9   : > { %v3302_v60 = vadd.f32 %v3301_v3, %v3183_v14 }
 0x2ca   : > { %v3303_v52 = vpop.f32.mrf.mxu1 }
 0x2cb   : > { %v3304_v19 = vadd.f32 %v3303_v52, %v3185_v40 }
 0x2cc   : > { %v3398_v33 = vpop.f32.mrf.mxu0 }
 0x2cd   : > { %v3399_v38 = vadd.f32 %v3398_v33, %v3302_v60 }
 0x2ce   : > { %v3400_v36 = vpop.f32.mrf.mxu0  ;;  %v3480_v18 = vpop.f32.mrf.mxu1 }
 0x2cf   : > { %v3481_v48 = vadd.f32 %v3480_v18, %v3391_v7  ;;  %v3401_v34 = vadd.f32 %v3400_v36, %v3304_v19  ;;  %v6599_v7 = vld [vmem:[#allocation9_spill] sm:$0xff] }
 0x2d0   : > { %v3482_v25 = vpop.f32.mrf.mxu1  ;;  %v3585_v5 = vpop.f32.mrf.mxu0 }
 0x2d1   : > { %v3483_v43 = vadd.f32 %v3482_v25, %v3393_v8  ;;  %v3586_v55 = vadd.f32 %v3585_v5, %v3481_v48 }
 0x2d2   : > { %v3587_v26 = vpop.f32.mrf.mxu0 }
 0x2d3   : > { %v3489_v39 = vpop.f32.mrf.mxu1  ;;  %v3588_v20 = vadd.f32 %v3587_v26, %v3483_v43 }
 0x2d4   : > { %v3592_v9 = vpop.f32.mrf.mxu0  ;;  %v3490_v17 = vadd.f32 %v3489_v39, %v3399_v38 }
 0x2d5   : > { %v3491_v49 = vpop.f32.mrf.mxu1 }
 0x2d6   : > { %v3492_v11 = vadd.f32 %v3491_v49, %v3401_v34  ;;  %v3594_v4 = vpop.f32.mrf.mxu0  ;;  %v3593_v28 = vadd.f32 %v3592_v9, %v3490_v17 }
 0x2d7   : > { %v3672_v13 = vpop.f32.mrf.mxu1 }
 0x2d8   : > { %v3673_v15 = vadd.f32 %v3672_v13, %v3586_v55  ;;  %v3595_v59 = vadd.f32 %v3594_v4, %v3492_v11 }
 0x2d9   : > { %v3674_v27 = vpop.f32.mrf.mxu1 }
 0x2da   : > { %v3675_v6 = vadd.f32 %v3674_v27, %v3588_v20  ;;  %4142 = vtanh.f32 %v3673_v15 }
 0x2db   : > { %v3679_v23 = vpop.f32.mrf.mxu1 }
 0x2dc   : > { %v3680_v1 = vadd.f32 %v3679_v23, %v3593_v28  ;;  %4144 = vtanh.f32 %v3675_v6 }
 0x2dd   : > { %v3681_v61 = vpop.f32.mrf.mxu1 }
 0x2de   : > { %4146 = vtanh.f32 %v3680_v1  ;;  %v3682_v16 = vadd.f32 %v3681_v61, %v3595_v59 }
 0x2e0   : > { %4148 = vtanh.f32 %v3682_v16 }
 0x2e7   : > { %v4143_v35 = vpop.eup %4142 }
 0x2e8   : > { %v3706_v63 = vmul.f32 %v4143_v35, %v6327_v31 }
 0x2e9   : > { %v4145_v2 = vpop.eup %4144 }
 0x2ea   : > { %v3707_v50 = vmul.f32 %v4145_v2, %v6327_v31 }
 0x2eb   : > { %v4147_v12 = vpop.eup %4146 }
 0x2ec   : > { %v3710_v51 = vmul.f32 %v4147_v12, %v6329_v10 }
 0x2ed   : > { %v4149_v32 = vpop.eup %4148 }
 0x2ee   : > { %v3726_v56 = vadd.f32 %v3710_v51, %v3706_v63  ;;  %v3711_v62 = vmul.f32 %v4149_v32, %v6329_v10  ;;  %v3774_v10 = vunpack.c.0.s8 %v3773_v37 }
 0x2f0   : > { %v3727_v46 = vrot.slane %v3726_v56, 4  ;;  %v3733_v44 = vadd.f32 %v3711_v62, %v3707_v50  ;;  %v3777_v60 = vsub.s32 %v3774_v10, %v6599_v7 }
 0x2f2   : > { %v3728_v57 = vadd.f32 %v3727_v46, %v3726_v56  ;;  %v3734_v30 = vrot.slane %v3733_v44, 4  ;;  %v3778_v5 = vrot.slane %v3770_v22, %v3777_v60 }
 0x2f4   : > { %v3729_v29 = vrot.slane %v3728_v57, 2  ;;  %v3735_v53 = vadd.f32 %v3734_v30, %v3733_v44 }
 0x2f6   : > { %v3730_v3 = vadd.f32 %v3729_v29, %v3728_v57  ;;  %v3736_v21 = vrot.slane %v3735_v53, 2 }
 0x2f8   : > { %v3731_v54 = vrot.slane %v3730_v3, 1  ;;  %v3737_v52 = vadd.f32 %v3736_v21, %v3735_v53 }
 0x2fa   : > { %v3732_v33 = vadd.f32 %v3731_v54, %v3730_v3  ;;  %v3738_v14 = vrot.slane %v3737_v52, 1 }
 0x2fc   : > { %v3739_v31 = vadd.f32 %v3738_v14, %v3737_v52  ;;  %v3758_v24 = vadd.f32 %v6207_v47, %v3732_v33 }
 0x2fe   : > { %v3759_v36 = vadd.f32 %v6211_v58, %v3739_v31  ;;  %v3764_v18 = vadd.f32 %v6336_v45, %v3758_v24  ;;  %v6600_v58 = vlaneseq }
 0x300   : > { %v3765_v40 = vadd.f32 %v6336_v45, %v3759_v36  ;;  %vm3797_vm6 = vcmp.lt.s32.totalorder %v6600_v58, 512 }
 0x302   : > { %v3771_v25 = vcombine.low %v3764_v18, %v3765_v40 }
 0x304   : > { %v3785_v8 = vrot.slane %v3771_v25, %v3777_v60 }
 0x306   : > { %v3786_v47 = vcombine.high %v3778_v5, %v3785_v8 }
 0x308   : > { %v3793_v19 = vrot.slane %v3786_v47, %v3777_v60 }
 0x30a   : > { %3799 = vst.msk [vmem:[%s297_s22] sm:$0xf] %vm3797_vm6, %v3793_v19 }
 0x30b   : > { %4191 = shalt.err (!%p4188_p9)
}
 0x30c   : > { %s4192_s23 = scalar_lea.hbm %s3813_s17, 64  ;;  %s4196_s25 = scalar_lea.hbm %s6406_s7, 256 }
 0x30d   : > { %p4193_p0 = scmp.ne.s32.totalorder %s3813_s17, %s4192_s23  ;;  %p4197_p1 = scmp.lt.s32.totalorder %s3813_s17, %s6406_s7 }
 0x30e   : > { %p4198_p3 = scmp.lt.s32.totalorder %s4196_s25, %s4192_s23 }
 0x30f   : > { %p4194_p2 = pnand %p4193_p0, %p6601_p11 }
 0x310   : > { %p4199_p6 = por %p4198_p3, %p4197_p1 }
 0x311   : > { %p4195_p13 = pneg %p4194_p2 }
 0x313   : > { %p4200_p10 = pnand %p4199_p6, %p4195_p13 }
 0x315   : > { %4203 = shalt.err (!%p4200_p10)
}
 0x316   : > { %4049 = dma.vmem_to_hbm [thread:$0]  (%p6601_p11), %s3816_s30, 64, %s3813_s17, %s3801_s18  }
 0x317 PF: > { %p4060_p12 = scmp.ge.s32.totalorder %s4242_s29, 2  ;;  %s3827_s22 = sand.u32 1, %s4230_s26  }
 0x318   : > { %p6602_p4 = scmp.ne.s32.totalorder %s6468_s15, 0  ;;  %s3828_s9 = scalar_lea.sflag [#allocation5], %s3827_s22 }
 0x31a   : > { %p4056_p5 = pnand %p4060_p12, %p6602_p4 }
 0x31c   : > { %p4057_p7 = pneg %p4056_p5 }
 0x31e   : > { %4225 = dma.done.wait (%p4057_p7), %s3828_s9, 64  }
 0x31f   : > { %4227 = vsyncadd (%p4057_p7), %s3828_s9, 4294967232  ;;  %p21_p8 = scmp.ge.s32.totalorder %s4321_s8, 6   ;;  %s6603_s26 = smov %s4234_s27 }
 0x320   : > { %s6604_s27 = smov %s4238_s28  ;;  %s6605_s28 = smov %s4333_s11 }
 0x321   : > { %s6606_s29 = smov %s4321_s8  ;;  %23 = sbr.rel (!%p21_p8) target bundleno = 7 (0x7), region = 95 }
 0x326   :  { %3833 = vsyncpa [#allocation4], 1 }
 0x327   :  { %3835 = vsyncpa [#allocation4 + $0x1], 1 }
 0x328   :  { %3836 = vsyncpa [#allocation5], 1 }
 0x329   :  { %3838 = vsyncpa [#allocation5 + $0x1], 1 }

</bundles_post_ra>
